<compile_context>
chip_gen: v7x
topology: tpu7x:2x2x1
jax: 0.10.0
libtpu: 0.0.40
codegen_flags: <defaults>
</compile_context>

<pallas_src>
import jax
import jax.numpy as jnp
from jax.experimental import pallas as pl
from jax.experimental.pallas import tpu as pltpu

EPS = 1e-5
LANE = 128


def _round_up(x, m):
    return ((x + m - 1) // m) * m


def _vmem_limit_bytes():
    cap = 128 * 1024 * 1024
    try:
        cap = int(getattr(pltpu.get_tpu_info(), "vmem_capacity_bytes", cap))
    except Exception:
        pass
    return int(cap // 2)          # leave headroom for double-buffered blocks


# --------------------------- Pallas kernels ---------------------------

def conv_stats_kernel(pat_ref, w_ref, sum_ref, sq_ref):
    """Pass 1: conv matmul on a row tile + per-channel sum / sum-of-squares.

    pat_ref : (TM, Kp)   im2col row tile (zero rows/cols contribute 0)
    w_ref   : (Kp, CT)   weight slab for this output-channel tile
    sum_ref, sq_ref : (1, CT)  resident accumulators across the row axis
    """
    r = pl.program_id(1)

    @pl.when(r == 0)
    def _():
        sum_ref[...] = jnp.zeros_like(sum_ref)
        sq_ref[...] = jnp.zeros_like(sq_ref)

    y = jnp.dot(pat_ref[...], w_ref[...],
                preferred_element_type=jnp.float32,
                precision=jax.lax.Precision.HIGHEST)
    sum_ref[...] += jnp.sum(y, axis=0, keepdims=True)
    sq_ref[...] += jnp.sum(y * y, axis=0, keepdims=True)


def conv_bn_relu_kernel(pat_ref, w_ref, scale_ref, shift_ref, o_ref):
    """Pass 2: recompute the (cheap) matmul and fuse BN scale/shift + ReLU."""
    y = jnp.dot(pat_ref[...], w_ref[...],
                preferred_element_type=jnp.float32,
                precision=jax.lax.Precision.HIGHEST)
    o_ref[...] = jnp.maximum(y * scale_ref[...] + shift_ref[...], 0.0)


# --------------------------- wrapper ---------------------------

def conv_layer(x_nchw, params, *, kernel_size=3, stride=1, row_tile=256):
    """ConvLayer forward. x_nchw: (N, Cin, H, W) float32 -> (N, Cout, Ho, Wo)."""
    w_t = jnp.asarray(params["w"], jnp.float32)           # (Cout, Cin, k, k)
    Cout, Cin, k, _ = w_t.shape
    assert k == kernel_size
    N, _, H, W = x_nchw.shape
    pad = k // 2
    assert pad < H and pad < W, "ReflectionPad2d requires pad < spatial size"

    Ho = (H + 2 * pad - k) // stride + 1
    Wo = (W + 2 * pad - k) // stride + 1

    # ---- reflection pad + im2col, built ONCE in the wrapper (XLA) ----
    x = jnp.transpose(x_nchw, (0, 2, 3, 1)).astype(jnp.float32)        # NHWC
    xp = jnp.pad(x, ((0, 0), (pad, pad), (pad, pad), (0, 0)), mode="reflect")
    patches = [
        xp[:, dy:dy + stride * (Ho - 1) + 1:stride,
              dx:dx + stride * (Wo - 1) + 1:stride, :]
        for dy in range(k) for dx in range(k)
    ]
    K = k * k * Cin
    pat = jnp.concatenate(patches, axis=-1).reshape(N * Ho * Wo, K)

    rows = N * Ho * Wo
    Kp = _round_up(K, LANE)                      # single K pad to lane width
    Cout_p = _round_up(Cout, LANE)
    CT = 256 if Cout_p % 256 == 0 else LANE      # wide channel tile on v6e/v7x
    TM = min(row_tile, _round_up(rows, 8))
    rows_p = _round_up(rows, TM)

    # Zero row / K padding: contributes exactly 0 to both sum and sum-of-squares
    # (no bias), so BN stats stay exact when divided by the true count.
    pat = jnp.pad(pat, ((0, rows_p - rows), (0, Kp - K)))

    # (Cout, Cin, k, k) -> (k, k, Cin, Cout) -> (K, Cout) -> zero-pad (Kp, Cout_p)
    w = jnp.transpose(w_t, (2, 3, 1, 0)).reshape(K, Cout)
    w = jnp.pad(w, ((0, Kp - K), (0, Cout_p - Cout)))

    # NOTE: params["b"] (conv bias) is intentionally unused — it cancels exactly
    # under training-mode BatchNorm's mean subtraction.

    n_ct = Cout_p // CT
    n_rt = rows_p // TM
    vmem_limit = _vmem_limit_bytes()

    # ---- pass 1: conv matmul + per-channel sum / sum-of-squares ----
    sums, sqs = pl.pallas_call(
        conv_stats_kernel,
        out_shape=(jax.ShapeDtypeStruct((1, Cout_p), jnp.float32),
                   jax.ShapeDtypeStruct((1, Cout_p), jnp.float32)),
        grid_spec=pltpu.PrefetchScalarGridSpec(
            num_scalar_prefetch=0,
            grid=(n_ct, n_rt),                         # reduction axis last
            in_specs=[
                pl.BlockSpec((TM, Kp), lambda j, r: (r, 0)),
                pl.BlockSpec((Kp, CT), lambda j, r: (0, j)),
            ],
            out_specs=(pl.BlockSpec((1, CT), lambda j, r: (0, j)),
                       pl.BlockSpec((1, CT), lambda j, r: (0, j))),
        ),
        compiler_params=pltpu.CompilerParams(
            dimension_semantics=("parallel", "arbitrary"),
            vmem_limit_bytes=vmem_limit),
    )(pat, w)

    # ---- tiny per-channel math between passes (XLA, (1, Cout_p) vectors) ----
    count = float(rows)
    mean = sums / count
    var = jnp.maximum(sqs / count - mean * mean, 0.0)    # cancellation guard
    inv = jax.lax.rsqrt(var + EPS)
    gamma = jnp.pad(jnp.asarray(params["gamma"], jnp.float32).reshape(1, -1),
                    ((0, 0), (0, Cout_p - Cout)), constant_values=1.0)
    beta = jnp.pad(jnp.asarray(params["beta"], jnp.float32).reshape(1, -1),
                   ((0, 0), (0, Cout_p - Cout)))
    scale = gamma * inv
    shift = beta - mean * scale

    # ---- pass 2: recompute matmul + fused BN scale/shift + ReLU ----
    out2d = pl.pallas_call(
        conv_bn_relu_kernel,
        out_shape=jax.ShapeDtypeStruct((rows_p, Cout_p), jnp.float32),
        grid_spec=pltpu.PrefetchScalarGridSpec(
            num_scalar_prefetch=0,
            grid=(n_ct, n_rt),
            in_specs=[
                pl.BlockSpec((TM, Kp), lambda j, r: (r, 0)),
                pl.BlockSpec((Kp, CT), lambda j, r: (0, j)),
                pl.BlockSpec((1, CT), lambda j, r: (0, j)),
                pl.BlockSpec((1, CT), lambda j, r: (0, j)),
            ],
            out_specs=pl.BlockSpec((TM, CT), lambda j, r: (r, j)),
        ),
        compiler_params=pltpu.CompilerParams(
            dimension_semantics=("parallel", "parallel"),
            vmem_limit_bytes=vmem_limit),
    )(pat, w, scale, shift)

    out = out2d[:rows, :Cout].reshape(N, Ho, Wo, Cout)
    return jnp.transpose(out, (0, 3, 1, 2))              # NHWC -> NCHW


# --------------------- pure-JAX reference (validation) ---------------------

def conv_layer_ref(x_nchw, params, *, kernel_size=3, stride=1):
    pad = kernel_size // 2
    x = jnp.transpose(x_nchw, (0, 2, 3, 1)).astype(jnp.float32)
    xp = jnp.pad(x, ((0, 0), (pad, pad), (pad, pad), (0, 0)), mode="reflect")
    w = jnp.transpose(jnp.asarray(params["w"], jnp.float32), (2, 3, 1, 0))
    y = jax.lax.conv_general_dilated(
        xp, w, (stride, stride), "VALID",
        dimension_numbers=("NHWC", "HWIO", "NHWC"),
        precision=jax.lax.Precision.HIGHEST)
    y = y + jnp.asarray(params["b"], jnp.float32).reshape(1, 1, 1, -1)
    m = y.mean(axis=(0, 1, 2))
    v = ((y - m) ** 2).mean(axis=(0, 1, 2))
    y = (y - m) / jnp.sqrt(v + EPS) * params["gamma"] + params["beta"]
    y = jnp.maximum(y, 0.0)
    return jnp.transpose(y, (0, 3, 1, 2))


# --------------------------- main ---------------------------

if __name__ == "__main__":
    key = jax.random.PRNGKey(0)
    kx, kw, kb, kg, kbe = jax.random.split(key, 5)

    N, Cin, H, W = 2, 4, 16, 16
    Cout, ksize, stride = 4, 3, 1

    x = jax.random.normal(kx, (N, Cin, H, W), jnp.float32)
    params = {
        "w": jax.random.normal(kw, (Cout, Cin, ksize, ksize), jnp.float32) * 0.1,
        "b": jax.random.normal(kb, (Cout,), jnp.float32) * 0.1,
        "gamma": 1.0 + 0.1 * jax.random.normal(kg, (Cout,), jnp.float32),
        "beta": 0.1 * jax.random.normal(kbe, (Cout,), jnp.float32),
    }

    out = jax.block_until_ready(
        conv_layer(x, params, kernel_size=ksize, stride=stride))
    ref = jax.block_until_ready(
        conv_layer_ref(x, params, kernel_size=ksize, stride=stride))

    assert out.shape == (N, Cout, H, W)
    max_err = float(jnp.max(jnp.abs(out - ref)))
    assert jnp.allclose(out, ref, atol=1e-3, rtol=1e-3), max_err
    print("KERNEL_OK")
</pallas_src>

<mosaic_0001>
module attributes {stable_mosaic.version = 11 : i64} {
  func.func @conv_stats_kernel(%arg0: i32, %arg1: i32, %arg2: memref<256x128xf32, #tpu.memory_space<vmem>>, %arg3: memref<128x128xf32, #tpu.memory_space<vmem>>, %arg4: memref<1x128xf32, #tpu.memory_space<vmem>>, %arg5: memref<1x128xf32, #tpu.memory_space<vmem>>) attributes {dimension_semantics = [#tpu.dimension_semantics<parallel>, #tpu.dimension_semantics<arbitrary>], iteration_bounds = array<i64: 1, 2>, scalar_prefetch = 0 : i64, scratch_operands = 0 : i64, tpu.core_type = #tpu.core_type<tc>, window_params = [{transform_indices = @transform_0, window_bounds = array<i64: 256, 128>}, {transform_indices = @transform_1, window_bounds = array<i64: 128, 128>}, {transform_indices = @transform_2, window_bounds = array<i64: 1, 128>}, {transform_indices = @transform_3, window_bounds = array<i64: 1, 128>}]} {
    %c0_i32 = arith.constant 0 : i32
    %0 = arith.cmpi eq, %arg1, %c0_i32 : i32
    %1 = arith.extui %0 : i1 to i32
    %c0_i32_0 = arith.constant 0 : i32
    %2 = arith.cmpi ne, %1, %c0_i32_0 : i32
    scf.if %2 {
      %cst_14 = arith.constant 0.000000e+00 : f32
      %17 = vector.broadcast %cst_14 : f32 to vector<1x128xf32>
      %c0_15 = arith.constant 0 : index
      %c0_16 = arith.constant 0 : index
      %18 = vector.load %arg4[%c0_15, %c0_16] : memref<1x128xf32, #tpu.memory_space<vmem>>, vector<1x128xf32>
      tpu.vector_store %arg4[%c0_15, %c0_16], %17 {strides = array<i32>} : memref<1x128xf32, #tpu.memory_space<vmem>>, vector<1x128xf32>,
      %cst_17 = arith.constant 0.000000e+00 : f32
      %19 = vector.broadcast %cst_17 : f32 to vector<1x128xf32>
      %c0_18 = arith.constant 0 : index
      %c0_19 = arith.constant 0 : index
      %20 = vector.load %arg5[%c0_18, %c0_19] : memref<1x128xf32, #tpu.memory_space<vmem>>, vector<1x128xf32>
      tpu.vector_store %arg5[%c0_18, %c0_19], %19 {strides = array<i32>} : memref<1x128xf32, #tpu.memory_space<vmem>>, vector<1x128xf32>,
    } else {
    }
    %c0 = arith.constant 0 : index
    %c0_1 = arith.constant 0 : index
    %3 = vector.load %arg2[%c0, %c0_1] : memref<256x128xf32, #tpu.memory_space<vmem>>, vector<256x128xf32>
    %c0_2 = arith.constant 0 : index
    %c0_3 = arith.constant 0 : index
    %4 = vector.load %arg3[%c0_2, %c0_3] : memref<128x128xf32, #tpu.memory_space<vmem>>, vector<128x128xf32>
    %cst = arith.constant dense<0.000000e+00> : vector<256x128xf32>
    %5 = tpu.matmul %3, %4, %cst {dimension_numbers = #tpu.dot_dimension_numbers<[1], [0], [0], [1], [0, 0, 1, 1], [], []>, precision = #tpu.contract_precision<fp32>} : vector<256x128xf32>, vector<128x128xf32>, vector<256x128xf32> -> vector<256x128xf32>
    %c0_4 = arith.constant 0 : index
    %c0_5 = arith.constant 0 : index
    %6 = vector.load %arg4[%c0_4, %c0_5] : memref<1x128xf32, #tpu.memory_space<vmem>>, vector<1x128xf32>
    %cst_6 = arith.constant dense<0.000000e+00> : vector<128xf32>
    %7 = vector.multi_reduction <add>, %5, %cst_6 [0] : vector<256x128xf32> to vector<128xf32>
    %8 = vector.shape_cast %7 : vector<128xf32> to vector<1x128xf32>
    %9 = arith.addf %6, %8 : vector<1x128xf32>
    %c0_7 = arith.constant 0 : index
    %c0_8 = arith.constant 0 : index
    %10 = vector.load %arg4[%c0_7, %c0_8] : memref<1x128xf32, #tpu.memory_space<vmem>>, vector<1x128xf32>
    tpu.vector_store %arg4[%c0_7, %c0_8], %9 {strides = array<i32>} : memref<1x128xf32, #tpu.memory_space<vmem>>, vector<1x128xf32>,
    %c0_9 = arith.constant 0 : index
    %c0_10 = arith.constant 0 : index
    %11 = vector.load %arg5[%c0_9, %c0_10] : memref<1x128xf32, #tpu.memory_space<vmem>>, vector<1x128xf32>
    %12 = arith.mulf %5, %5 : vector<256x128xf32>
    %cst_11 = arith.constant dense<0.000000e+00> : vector<128xf32>
    %13 = vector.multi_reduction <add>, %12, %cst_11 [0] : vector<256x128xf32> to vector<128xf32>
    %14 = vector.shape_cast %13 : vector<128xf32> to vector<1x128xf32>
    %15 = arith.addf %11, %14 : vector<1x128xf32>
    %c0_12 = arith.constant 0 : index
    %c0_13 = arith.constant 0 : index
    %16 = vector.load %arg5[%c0_12, %c0_13] : memref<1x128xf32, #tpu.memory_space<vmem>>, vector<1x128xf32>
    tpu.vector_store %arg5[%c0_12, %c0_13], %15 {strides = array<i32>} : memref<1x128xf32, #tpu.memory_space<vmem>>, vector<1x128xf32>,
    return
  }
  func.func @transform_0(%arg0: i32, %arg1: i32) -> (i32, i32) {
    %c0_i32 = arith.constant 0 : i32
    %c0_i32_0 = arith.constant 0 : i32
    return %arg1, %c0_i32 : i32, i32
  }
  func.func @transform_1(%arg0: i32, %arg1: i32) -> (i32, i32) {
    %c0_i32 = arith.constant 0 : i32
    %c0_i32_0 = arith.constant 0 : i32
    return %c0_i32, %arg0 : i32, i32
  }
  func.func @transform_2(%arg0: i32, %arg1: i32) -> (i32, i32) {
    %c0_i32 = arith.constant 0 : i32
    %c0_i32_0 = arith.constant 0 : i32
    return %c0_i32, %arg0 : i32, i32
  }
  func.func @transform_3(%arg0: i32, %arg1: i32) -> (i32, i32) {
    %c0_i32 = arith.constant 0 : i32
    %c0_i32_0 = arith.constant 0 : i32
    return %c0_i32, %arg0 : i32, i32
  }
}

</mosaic_0001>

<bundles_post_ra>
// kernel: tpu_custom_call.1
= control target key start
LH: loop header
LB: loop body
LE: loop exit
PB: predicated region body
PF: predicated region fallthrough
CT: control target
= control target key end

     0   :  { %9 = vsyncpa [#allocation3], 0  ;;  %s4913_s0 = inlined_call_operand.hbm [shape: f32[512,128], index: 0, kind: input, shape index: {}]   ;;  %s4914_s1 = inlined_call_operand.hbm [shape: f32[128,128], index: 1, kind: input, shape index: {}]   ;;  %s4915_s2 = inlined_call_operand.hbm [shape: f32[1,128], index: 2, kind: output, shape index: {0}]   ;;  %s4916_s3 = inlined_call_operand.hbm [shape: f32[1,128], index: 3, kind: output, shape index: {1}]  }
   0x1   :  { %11 = vsyncpa [#allocation3 + $0x1], 0 }
   0x2   :  { %12 = vsyncpa [#allocation6], 0 }
   0x3   :  { %13 = vsyncpa [#allocation4], 0 }
   0x4   :  { %14 = vsyncpa [#allocation9], 0  ;;  %s3891_s12 = smov 0   ;;  %s3893_s13 = smov 0  }
   0x5   :  { %s3895_s14 = smov 0   ;;  %s3897_s15 = smov 0  }
   0x6   :  { %s3899_s16 = smov 0   ;;  %s3901_s17 = smov 0  }
   0x7 LB: > { %s2469_s18 = sadd.s32 4294967295, %s3862_s17   ;;  %p52_p0 = scmp.ne.s32.totalorder %s3846_s13, %s3842_s12  ;;  %s3862_s17 = sphi %s3901_s17, %s20_s17   ;;  %s3858_s16 = sphi %s3899_s16, %s5120_s16   ;;  %s3854_s15 = sphi %s3897_s15, %s5119_s15   ;;  %s3850_s14 = sphi %s3895_s14, %s5118_s14   ;;  %s3846_s13 = sphi %s3893_s13, %s5117_s13   ;;  %s3842_s12 = sphi %s3891_s12, %s5116_s12  }
   0x8   : > { %p3923_p1 = scmp.eq.s32.totalorder %s2469_s18, 0  ;;  %p2470_p2 = scmp.ge.s32.totalorder %s3862_s17, 1 }
   0x9   : > { %p141_p3 = scmp.lt.s32.totalorder %s3862_s17, 3  ;;  %s3864_s22 = smov [#allocation5]  }
   0xa   : > { %s4986_s19 = scalar_select %p3923_p1, 1, 0 }
   0xb   : > { %p3931_p4 = por %p3923_p1, %p52_p0  ;;  %p3935_p5 = pnand %p2470_p2, %p141_p3 }
   0xc   : > { %s155_s23 = sshll.u32 %s3864_s22, 4  ;;  %s29_s25 = sadd.s32 1, %s3858_s16  ;;  %s156_s23 = int_to_ptr.vmem [resolvable:$true] %s155_s23 }
   0xd   : > { %s4987_s20 = scalar_select %p3931_p4, 1, 0 }
   0xe   : > { %s4988_s21 = scalar_select %p3935_p5, 1, 0 }
   0xf   : > { %p3621_p6 = pneg %p3935_p5  ;;  %s3690_s28 = scalar_lea.hbm %s4914_s1, 2048 }
  0x10   : > { %p3691_p8 = scmp.ne.s32.totalorder %s4914_s1, %s3690_s28  ;;  %p3697_p12 = scmp.lt.u32.totalorder %s3690_s28, %s4914_s1 }
  0x11   : > { %p3943_p7 = pnand %p3621_p6, %p3923_p1 }
  0x13   : > { %p3692_p9 = pneg %p3943_p7 }
  0x15   : > { %p3693_p10 = pnand %p3692_p9, %p3691_p8 }
  0x17   : > { %p3694_p11 = pneg %p3693_p10 }
  0x19   : > { %p3699_p13 = pnand %p3697_p12, %p3694_p11 }
  0x1b   : > { %3702 = shalt.err (!%p3699_p13)
}
  0x1c   : > { %s3703_s6 = scalar_lea.vmem %s156_s23, 2048  ;;  %p3711_p6 = scmp.lt.s32.totalorder %s156_s23, %s156_s23 }
  0x1d   : > { %p3704_p0 = scmp.ne.s32.totalorder %s156_s23, %s3703_s6  ;;  %p3712_p1 = scmp.lt.s32.totalorder %s3703_s6, %s3703_s6 }
  0x1f   : > { %p3706_p2 = pnand %p3704_p0, %p3692_p9  ;;  %p3713_p4 = por %p3712_p1, %p3711_p6 }
  0x21   : > { %p3707_p3 = pneg %p3706_p2 }
  0x23   : > { %p3714_p5 = pnand %p3713_p4, %p3707_p3 }
  0x25   : > { %3717 = shalt.err (!%p3714_p5)
}
  0x26   : > { %s3865_s7 = smov 128   ;;  %s3866_s8 = smov 8  }
  0x27   : > { %3624 = dma.hbm_to_vmem [thread:$0]  (!%p3943_p7), %s4914_s1, 2048, %s156_s23, [#allocation6], %s3865_s7, %s3865_s7, %s3866_s8  }
  0x28   : > { %p30_p1 = scmp.ge.s32.totalorder %s29_s25, 2  ;;  %s39_s11 = sadd.s32 1, %s3850_s14 }
  0x29   : > { %p46_p4 = scmp.ne.s32.totalorder %s3850_s14, %s3846_s13  ;;  %p47_p5 = scmp.eq.s32.totalorder %s3862_s17, 0 }
  0x2a   : > { %s5122_s25 = smov (%p30_p1, %s29_s25), 0  ;;  %p3630_p9 = scmp.lt.s32.totalorder %s3862_s17, 2 }
  0x2b   : > { %p48_p8 = por %p47_p5, %p46_p4  ;;  %s36_s12 = ssub.s32 %s3858_s16, %s5122_s25 }
  0x2c   : > { %s169_s22 = sand.u32 1, %s3850_s14   ;;  %p37_p10 = scmp.eq.s32.totalorder %s36_s12, 0 }
  0x2d   : > { %s2473_s24 = sshll.u32 %s169_s22, 8  ;;  %s2486_s26 = sshll.u32 %s3858_s16, 12 }
  0x2e   : > { %s3979_s27 = scalar_select %p37_p10, %s3850_s14, %s39_s11  }
  0x2f   : > { %s3984_s23 = scalar_lea.hbm %s4913_s0, %s2486_s26  ;;  %s173_s30 = scalar_lea.vmem [#allocation2], %s2473_s24 }
  0x30   : > { %s180_s4 = sshll.u32 %s173_s30, 4  ;;  %p3986_p7 = pnand %p3630_p9, %p48_p8  ;;  %s3990_s4 = int_to_ptr.vmem [resolvable:$true] %s180_s4 }
  0x31   : > { %s3992_s6 = scalar_lea.sflag [#allocation3], %s169_s22  ;;  %s3718_s9 = scalar_lea.hbm %s3984_s23, 4096 }
  0x32   : > { %p3719_p11 = scmp.ne.s32.totalorder %s3984_s23, %s3718_s9  ;;  %p3720_p12 = pneg %p3986_p7 }
  0x33   : > { %s3723_s12 = scalar_lea.hbm %s4913_s0, 8192  ;;  %p3724_p2 = scmp.lt.u32.totalorder %s3984_s23, %s4913_s0 }
  0x34   : > { %p3721_p13 = pnand %p3720_p12, %p3719_p11  ;;  %p3725_p3 = scmp.lt.u32.totalorder %s3723_s12, %s3718_s9 }
  0x35   : > { %p3727_p1 = scmp.lt.u32.totalorder %s3718_s9, %s3984_s23 }
  0x36   : > { %p3722_p0 = pneg %p3721_p13  ;;  %p3726_p6 = por %p3725_p3, %p3724_p2 }
  0x38   : > { %p3728_p4 = por %p3727_p1, %p3726_p6 }
  0x3a   : > { %p3729_p5 = pnand %p3728_p4, %p3722_p0 }
  0x3c   : > { %3732 = shalt.err (!%p3729_p5)
}
  0x3d   : > { %s3733_s22 = scalar_lea.vmem %s3990_s4, 4096  ;;  %s3867_s28 = smov [#allocation2]  }
  0x3e   : > { %p3734_p8 = scmp.ne.s32.totalorder %s3990_s4, %s3733_s22  ;;  %s3738_s29 = sshll.u32 %s3867_s28, 4  ;;  %s3739_s29 = int_to_ptr.vmem [resolvable:$false] %s3738_s29 }
  0x3f   : > { %s3740_s30 = scalar_lea.vmem %s3739_s29, 8192  ;;  %p3741_p11 = scmp.lt.s32.totalorder %s3990_s4, %s3739_s29 }
  0x40   : > { %p3736_p9 = pnand %p3734_p8, %p3720_p12  ;;  %p3742_p13 = scmp.lt.s32.totalorder %s3740_s30, %s3733_s22 }
  0x42   : > { %p3737_p10 = pneg %p3736_p9  ;;  %p3743_p2 = por %p3742_p13, %p3741_p11 }
  0x44   : > { %p3744_p3 = pnand %p3743_p2, %p3737_p10 }
  0x46   : > { %3747 = shalt.err (!%p3744_p3)
}
  0x47   : > { %3628 = dma.hbm_to_vmem [thread:$0]  (!%p3986_p7), %s3984_s23, 4096, %s3990_s4, %s3992_s6, %s3865_s7, %s3865_s7, %s3866_s8  }
  0x48   : > { %p4991_p12 = scmp.ne.s32.totalorder %s4988_s21, 0 }
  0x4a   : > { %192 = sbr.rel (%p4991_p12) target bundleno = 598 (0x256), region = 28 }
  0x51   : > { %s194_s9 = sand.u32 1, %s3846_s13   ;;  %p4992_p0 = scmp.ne.s32.totalorder %s4987_s20, 0 }
  0x52   : > { %s2477_s10 = sshll.u32 %s194_s9, 8  ;;  %s195_s11 = scalar_lea.sflag [#allocation3], %s194_s9 }
  0x53   : > { %s4026_s12 = scalar_lea.vmem [#allocation2], %s2477_s10 }
  0x54   : > { %3825 = dma.done.wait (%p4992_p0), %s195_s11, 4096  }
  0x55   : > { %3827 = vsyncadd (%p4992_p0), %s195_s11, 4294963200  ;;  %p4993_p6 = scmp.ne.s32.totalorder %s4986_s19, 0 }
  0x57   : > { %3829 = dma.done.wait (%p4993_p6), [#allocation6], 2048  }
  0x58   : > { %3831 = vsyncadd (%p4993_p6), [#allocation6], 4294965248  ;;  %p2479_p7 = scmp.ne.s32.totalorder %s3854_s15, 0 }
  0x59   : > { %v3868_v0 = vmov (!%p2479_p7), 0.0  }
  0x5a   : > { %224 = sbr.rel (%p2479_p7) target bundleno = 97 (0x61), region = 40  ;;  %225 = vst [vmem:[#allocation7] sm:$0x1] (!%p2479_p7), %v3868_v0  ;;  %226 = vst [vmem:[#allocation8] sm:$0x1] (!%p2479_p7), %v3868_v0 }
  0x61 PF: > { %v259_v1 = vld [vmem:[#allocation5] sm:$0xff]  ;;  %v260_v2 = vld [vmem:[#allocation5 + $0x8] sm:$0xff]  ;;  %v4037_v3 = vld [vmem:[#allocation5 + $0x10] sm:$0xff]  ;;  %s3869_s15 = smov [#allocation7]   ;;  %p4839_p1 = scmp.eq.s32.totalorder %s2469_s18, 1 }
  0x62   : > { %v276_v4 = vand.u32 4294901760, %v259_v1  ;;  %v279_v5 = vand.u32 4294901760, %v260_v2  ;;  %v4039_v6 = vld [vmem:[#allocation5 + $0x18] sm:$0xff]  ;;  %v282_v7 = vand.u32 4294901760, %v4037_v3  ;;  %v4042_v8 = vld [vmem:[#allocation5 + $0x20] sm:$0xff]  ;;  %v4044_v9 = vld [vmem:[#allocation5 + $0x28] sm:$0xff] }
  0x63   : > { %v285_v10 = vand.u32 4294901760, %v4039_v6  ;;  %v288_v12 = vand.u32 4294901760, %v4042_v8  ;;  %v291_v13 = vand.u32 4294901760, %v4044_v9  ;;  %v4057_v15 = vld [vmem:[#allocation5 + $0x30] sm:$0xff]  ;;  %v4059_v16 = vld [vmem:[#allocation5 + $0x38] sm:$0xff]  ;;  %v227_v17 = vld [vmem:[%s4026_s12] sm:$0xff] }
  0x64   : > { %v4047_v11 = vpack.c.bf16 %v279_v5, %v276_v4  ;;  %v4066_v18 = vand.u32 4294901760, %v227_v17  ;;  %v294_v20 = vand.u32 4294901760, %v4057_v15  ;;  %v297_v21 = vand.u32 4294901760, %v4059_v16  ;;  %v4078_v22 = vld [vmem:[#allocation5 + $0x40] sm:$0xff]  ;;  %v4080_v23 = vld [vmem:[#allocation5 + $0x48] sm:$0xff]  ;;  %v4099_v30 = vld [vmem:[#allocation5 + $0x50] sm:$0xff] }
  0x65   : > { %v4055_v14 = vpack.c.bf16 %v285_v10, %v282_v7  ;;  %v4074_v19 = vpack.c.bf16 %v291_v13, %v288_v12  ;;  %v228_v26 = vld [vmem:[%s4026_s12 + $0x8] sm:$0xff]  ;;  %v4929_v28 = vand.u32 4294901760, %v4078_v22  ;;  %v4928_v29 = vand.u32 4294901760, %v4080_v23  ;;  %v4101_v31 = vld [vmem:[#allocation5 + $0x58] sm:$0xff]  ;;  %v229_v33 = vld [vmem:[%s4026_s12 + $0x10] sm:$0xff]  ;;  %s2370_s19 = sshll.u32 %s3869_s15, 4  ;;  %s2371_s19 = int_to_ptr.vmem [resolvable:$true] %s2370_s19 }
  0x66   : > { %3256 = vmatprep.subr.bf16.mxu1 %v4047_v11  ;;  %3352 = vmatprep.subr.bf16.mxu0 %v4047_v11  ;;  %v4083_v24 = vsub.f32 %v227_v17, %v4066_v18  ;;  %v4095_v27 = vpack.c.bf16 %v297_v21, %v294_v20  ;;  %v4105_v34 = vand.u32 4294901760, %v228_v26  ;;  %v230_v35 = vld [vmem:[%s4026_s12 + $0x18] sm:$0xff]  ;;  %v4926_v36 = vand.u32 4294901760, %v4099_v30  ;;  %v4112_v38 = vld [vmem:[#allocation5 + $0x60] sm:$0xff]  ;;  %v4124_v42 = vld [vmem:[#allocation5 + $0x68] sm:$0xff]  ;;  %s3870_s21 = smov [#allocation8]   ;;  %p3755_p9 = scmp.lt.s32.totalorder %s2371_s19, %s2371_s19 }
  0x67   : > { %3258 = vmatpush3.bf16.msra.mxu1 %v4047_v11  ;;  %3354 = vmatpush3.bf16.msra.mxu0 %v4047_v11  ;;  %v4925_v37 = vand.u32 4294901760, %v4101_v31  ;;  %v4114_v40 = vsub.f32 %v259_v1, %v276_v4  ;;  %v4122_v41 = vpack.c.bf16 %v4928_v29, %v4929_v28  ;;  %v4126_v43 = vsub.f32 %v260_v2, %v279_v5  ;;  %v231_v45 = vld [vmem:[%s4026_s12 + $0x20] sm:$0xff]  ;;  %v4134_v48 = vld [vmem:[#allocation5 + $0x70] sm:$0xff]  ;;  %v4136_v49 = vld [vmem:[#allocation5 + $0x78] sm:$0xff]  ;;  %s2383_s7 = sshll.u32 %s3870_s21, 4  ;;  %s3748_s8 = scalar_lea.vmem %s2371_s19, 16  ;;  %s4843_s7 = int_to_ptr.vmem [resolvable:$true] %s2383_s7 }
  0x68   : > { %3260 = vmatprep.subr.bf16.mxu1 %v4055_v14  ;;  %3356 = vmatprep.subr.bf16.mxu0 %v4055_v14  ;;  %4994 = vst [vmem:[#allocation14_spill] sm:$0xff] %v4083_v24  ;;  %v358_v25 = vand.u32 4294901760, %v4083_v24  ;;  %4995 = vst [vmem:[#allocation15_spill] sm:$0xff] %v4095_v27  ;;  %v4128_v44 = vand.u32 4294901760, %v229_v33  ;;  %v4131_v46 = vand.u32 4294901760, %v230_v35  ;;  %v4924_v47 = vand.u32 4294901760, %v4112_v38  ;;  %p3749_p4 = scmp.ne.s32.totalorder %s2371_s19, %s3748_s8 }
  0x69   : > { %4996 = vst [vmem:[#allocation16_spill] sm:$0xff] %v4122_v41  ;;  %v4139_v50 = vsub.f32 %v228_v26, %v4105_v34  ;;  %v4147_v51 = vpack.c.bf16 %v4925_v37, %v4926_v36  ;;  %v4923_v52 = vand.u32 4294901760, %v4124_v42  ;;  %v679_v53 = vand.u32 4294901760, %v4114_v40  ;;  %v232_v57 = vld [vmem:[%s4026_s12 + $0x28] sm:$0xff]  ;;  %v233_v4 = vld [vmem:[%s4026_s12 + $0x30] sm:$0xff]  ;;  %v234_v5 = vld [vmem:[%s4026_s12 + $0x38] sm:$0xff] }
  0x6a   : > { %v359_v32 = vsub.f32 %v4083_v24, %v358_v25  ;;  %3047 = vmatprep.mubr.f32.mxu0 %v358_v25  ;;  %v4151_v54 = vand.u32 4294901760, %v231_v45  ;;  %v686_v55 = vand.u32 4294901760, %v4126_v43  ;;  %v4157_v56 = vsub.f32 %v229_v33, %v4128_v44  ;;  %v235_v25 = vld [vmem:[%s4026_s12 + $0x40] sm:$0xff]  ;;  %v238_v24 = vld [vmem:[%s4026_s12 + $0x58] sm:$0xff]  ;;  %p3750_p5 = pnand %p3749_p4, %p4839_p1  ;;  %s3754_s18 = scalar_lea.vmem %s2371_s19, 32 }
  0x6b   : > { %3262 = vmatpush3.bf16.msra.mxu1 %v4055_v14  ;;  %3358 = vmatpush3.bf16.msra.mxu0 %v4055_v14  ;;  %4997 = vst [vmem:[#allocation17_spill] sm:$0xff] %v4139_v50  ;;  %4998 = vst [vmem:[#allocation18_spill] sm:$0xff] %v4147_v51  ;;  %v4163_v58 = vsub.f32 %v4037_v3, %v282_v7  ;;  %v4168_v59 = vsub.f32 %v4039_v6, %v285_v10  ;;  %v4922_v60 = vand.u32 4294901760, %v4134_v48  ;;  %p3756_p10 = scmp.lt.s32.totalorder %s3754_s18, %s3748_s8 }
  0x6c   : > { %3264 = vmatprep.subr.bf16.mxu1 %v4074_v19  ;;  %3360 = vmatprep.subr.bf16.mxu0 %v4074_v19  ;;  %v360_v39 = vand.u32 4294901760, %v359_v32  ;;  %4999 = vst [vmem:[#allocation19_spill] sm:$0xff] %v4157_v56  ;;  %v4921_v61 = vand.u32 4294901760, %v4136_v49  ;;  %v4173_v62 = vsub.f32 %v230_v35, %v4131_v46  ;;  %v4931_v63 = vand.u32 4294901760, %v4139_v50  ;;  %p3751_p8 = pneg %p3750_p5 }
  0x6d   : > { %v4182_v0 = vpack.c.bf16 %v4923_v52, %v4924_v47  ;;  %v680_v1 = vsub.f32 %v4114_v40, %v679_v53  ;;  %v4186_v2 = vsub.f32 %v231_v45, %v4151_v54  ;;  %v4188_v3 = vand.u32 4294901760, %v232_v57  ;;  %v236_v52 = vld [vmem:[%s4026_s12 + $0x48] sm:$0xff]  ;;  %p3757_p11 = por %p3756_p10, %p3755_p9 }
  0x6e   : > { %2807 = vmatprep.mubr.f32.mxu1 %v360_v39  ;;  %5000 = vst [vmem:[#allocation20_spill] sm:$0xff] %v4173_v62  ;;  %v687_v6 = vsub.f32 %v4126_v43, %v686_v55  ;;  %v4927_v7 = vand.u32 4294901760, %v4157_v56  ;;  %v4933_v10 = vand.u32 4294901760, %v4163_v58  ;;  %v4932_v17 = vand.u32 4294901760, %v4168_v59 }
  0x6f   : > { %3266 = vmatpush3.bf16.msra.mxu1 %v4074_v19  ;;  %3362 = vmatpush3.bf16.msra.mxu0 %v4074_v19  ;;  %5001 = vst [vmem:[#allocation21_spill] sm:$0xff] %v4182_v0  ;;  %5002 = vst [vmem:[#allocation22_spill] sm:$0xff] %v4186_v2  ;;  %v4203_v26 = vpack.c.bf16 %v4921_v61, %v4922_v60  ;;  %v4930_v32 = vand.u32 4294901760, %v4173_v62  ;;  %v4209_v33 = vsub.f32 %v4042_v8, %v288_v12  ;;  %p3758_p13 = pnand %p3757_p11, %p3751_p8 }
  0x70   : > { %3268 = vmatprep.subr.bf16.mxu1 %v4095_v27  ;;  %3364 = vmatprep.subr.bf16.mxu0 %v4095_v27  ;;  %5003 = vst [vmem:[#allocation23_spill] sm:$0xff] %v4188_v3  ;;  %v4214_v35 = vsub.f32 %v4044_v9, %v291_v13  ;;  %v4219_v39 = vsub.f32 %v4139_v50, %v4931_v63  ;;  %v4223_v61 = vand.u32 4294901760, %v233_v4  ;;  %v4225_v60 = vand.u32 4294901760, %v234_v5 }
  0x71   : > { %5004 = vst [vmem:[#allocation24_spill] sm:$0xff] %v4203_v26  ;;  %v4221_v45 = vpack.c.bf16 %v686_v55, %v679_v53  ;;  %v681_v8 = vand.u32 4294901760, %v680_v1  ;;  %v4934_v12 = vand.u32 4294901760, %v4186_v2  ;;  %v4231_v9 = vsub.f32 %v232_v57, %v4188_v3 }
  0x72   : > { %5005 = vst [vmem:[#allocation25_spill] sm:$0xff] %v4223_v61  ;;  %5006 = vst [vmem:[#allocation26_spill] sm:$0xff] %v4225_v60  ;;  %v4233_v13 = vand.u32 4294901760, %v235_v25  ;;  %v688_v53 = vand.u32 4294901760, %v687_v6  ;;  %v4241_v55 = vsub.f32 %v4157_v56, %v4927_v7  ;;  %v694_v1 = vsub.f32 %v4163_v58, %v4933_v10 }
  0x73   : > { %3270 = vmatpush3.bf16.msra.mxu1 %v4095_v27  ;;  %3366 = vmatpush3.bf16.msra.mxu0 %v4095_v27  ;;  %5007 = vst [vmem:[#allocation27_spill] sm:$0xff] %v4231_v9  ;;  %v701_v57 = vsub.f32 %v4168_v59, %v4932_v17  ;;  %v4252_v47 = vsub.f32 %v4173_v62, %v4930_v32  ;;  %v707_v6 = vand.u32 4294901760, %v4209_v33  ;;  %v714_v37 = vand.u32 4294901760, %v4214_v35 }
  0x74   : > { %3272 = vmatprep.subr.bf16.mxu1 %v4122_v41  ;;  %3368 = vmatprep.subr.bf16.mxu0 %v4122_v41  ;;  %5008 = vst [vmem:[#allocation28_spill] sm:$0xff] %v4233_v13  ;;  %v4259_v36 = vsub.f32 %v4057_v15, %v294_v20  ;;  %v4262_v7 = vsub.f32 %v233_v4, %v4223_v61  ;;  %v4267_v28 = vand.u32 4294901760, %v236_v52  ;;  %v370_v15 = vand.u32 4294901760, %v4219_v39  ;;  %v237_v39 = vld [vmem:[%s4026_s12 + $0x50] sm:$0xff] }
  0x75   : > { %v4265_v29 = vsub.f32 %v234_v5, %v4225_v60  ;;  %v4272_v32 = vsub.f32 %v4059_v16, %v297_v21  ;;  %v4280_v20 = vsub.f32 %v4186_v2, %v4934_v12  ;;  %v4284_v5 = vsub.f32 %v235_v25, %v4233_v13 }
  0x76   : > { %5009 = vst [vmem:[#allocation29_spill] sm:$0xff] %v4262_v7  ;;  %5011 = vst [vmem:[#allocation31_spill] sm:$0xff] %v4267_v28  ;;  %v3287_v16 = vpack.c.bf16 %v688_v53, %v681_v8  ;;  %v380_v21 = vand.u32 4294901760, %v4241_v55  ;;  %v695_v63 = vand.u32 4294901760, %v694_v1  ;;  %v702_v17 = vand.u32 4294901760, %v701_v57 }
  0x77   : > { %3274 = vmatpush3.bf16.msra.mxu1 %v4122_v41  ;;  %3370 = vmatpush3.bf16.msra.mxu0 %v4122_v41  ;;  %5010 = vst [vmem:[#allocation30_spill] sm:$0xff] %v4265_v29  ;;  %5012 = vst [vmem:[#allocation32_spill] sm:$0xff] %v4284_v5  ;;  %v708_v10 = vsub.f32 %v4209_v33, %v707_v6  ;;  %v715_v12 = vsub.f32 %v4214_v35, %v714_v37  ;;  %v400_v1 = vand.u32 4294901760, %v4280_v20  ;;  %v240_v41 = vld [vmem:[%s4026_s12 + $0x68] sm:$0xff] }
  0x78   : > { %3276 = vmatprep.subr.bf16.mxu1 %v4147_v51  ;;  %3372 = vmatprep.subr.bf16.mxu0 %v4147_v51  ;;  %v4300_v55 = vsub.f32 %v236_v52, %v4267_v28  ;;  %v5014_v57 = vand.u32 4294901760, %v4231_v9  ;;  %v4311_v4 = vand.u32 4294901760, %v237_v39  ;;  %v3291_v52 = vpack.c.bf16 %v702_v17, %v695_v63 }
  0x79   : > { %v5016_v53 = vand.u32 4294901760, %v4163_v58  ;;  %v5017_v8 = vand.u32 4294901760, %v4168_v59  ;;  %v4318_v28 = vand.u32 4294901760, %v238_v24  ;;  %v716_v13 = vand.u32 4294901760, %v715_v12 }
  0x7a   : > { %5013 = vst [vmem:[#allocation33_spill] sm:$0xff] %v4300_v55  ;;  %v4308_v25 = vsub.f32 %v4231_v9, %v5014_v57  ;;  %5015 = vst [vmem:[#allocation34_spill] sm:$0xff] %v4311_v4  ;;  %v709_v57 = vand.u32 4294901760, %v708_v10  ;;  %v5019_v27 = vand.u32 4294901760, %v4272_v32  ;;  %v5020_v17 = vand.u32 4294901760, %v4139_v50 }
  0x7b   : > { %3278 = vmatpush3.bf16.msra.mxu1 %v4147_v51  ;;  %3374 = vmatpush3.bf16.msra.mxu0 %v4147_v51  ;;  %v390_v51 = vand.u32 4294901760, %v4252_v47  ;;  %v5018_v47 = vand.u32 4294901760, %v4259_v36  ;;  %v5022_v61 = vand.u32 4294901760, %v4265_v29  ;;  %v5027_v12 = vand.u32 4294901760, %v4080_v23 }
  0x7c   : > { %3280 = vmatprep.subr.bf16.mxu1 %v4182_v0  ;;  %3376 = vmatprep.subr.bf16.mxu0 %v4182_v0  ;;  %v729_v63 = vsub.f32 %v4272_v32, %v5019_v27  ;;  %v5024_v27 = vand.u32 4294901760, %v4284_v5 }
  0x7d   : > { %v722_v60 = vsub.f32 %v4259_v36, %v5018_v47  ;;  %v4337_v10 = vsub.f32 %v4265_v29, %v5022_v61  ;;  %v5023_v47 = vand.u32 4294901760, %v4078_v22  ;;  %v4354_v61 = vand.u32 4294901760, %v240_v41 }
  0x7e   : > { %v4360_v50 = vsub.f32 %v4080_v23, %v5027_v12  ;;  %v730_v23 = vand.u32 4294901760, %v729_v63  ;;  %v5031_v12 = vand.u32 4294901760, %v4173_v62  ;;  %v242_v63 = vld [vmem:[%s4026_s12 + $0x78] sm:$0xff]  ;;  %v5037_v62 = vand.u32 4294901760, %v4272_v32 }
  0x7f   : > { %3282 = vmatpush3.bf16.msra.mxu1 %v4182_v0  ;;  %3378 = vmatpush3.bf16.msra.mxu0 %v4182_v0  ;;  %v239_v0 = vld [vmem:[%s4026_s12 + $0x60] sm:$0xff]  ;;  %v4343_v3 = vsub.f32 %v4078_v22, %v5023_v47  ;;  %5026 = vst [vmem:[#allocation36_spill] sm:$0xff] %v4354_v61  ;;  %v5028_v22 = vand.u32 4294901760, %v4157_v56 }
  0x80   : > { %3284 = vmatprep.subr.bf16.mxu1 %v4203_v26  ;;  %3380 = vmatprep.subr.bf16.mxu0 %v4203_v26  ;;  %v4320_v20 = vand.u32 4294901760, %v239_v0 }
  0x82   : > { %v4368_v47 = vsub.f32 %v239_v0, %v4320_v20 }
  0x83   : > { %3286 = vmatpush3.bf16.msra.mxu1 %v4203_v26  ;;  %3382 = vmatpush3.bf16.msra.mxu0 %v4203_v26  ;;  %v3387_v26 = vpack.c.bf16 %v5017_v8, %v5016_v53  ;;  %v5021_v8 = vand.u32 4294901760, %v4262_v7 }
  0x84   : > { %3288 = vmatprep.subr.bf16.mxu1 %v3287_v16  ;;  %3384 = vmatprep.subr.bf16.mxu0 %v4221_v45  ;;  %5030 = vst [vmem:[#allocation38_spill] sm:$0xff] %v4368_v47 }
  0x85   : > { %v419_v53 = vsub.f32 %v4262_v7, %v5021_v8  ;;  %v241_v8 = vld [vmem:[%s4026_s12 + $0x70] sm:$0xff] }
  0x86   : > { %2808 = vmatmul.mubr.f32.vlgmr.msra.gmra.mrb[0].mxu1 %v370_v15  ;;  %3048 = vmatmul.mubr.f32.vlgmr.msra.gmra.mrb[0].mxu0 %v5020_v17  ;;  %v4349_v15 = vsub.f32 %v4284_v5, %v5024_v27  ;;  %v4352_v17 = vsub.f32 %v237_v39, %v4311_v4  ;;  %v735_v39 = vand.u32 4294901760, %v4343_v3  ;;  %v3295_v27 = vpack.c.bf16 %v716_v13, %v709_v57 }
  0x87   : > { %3290 = vmatpush3.bf16.msra.mxu1 %v3287_v16  ;;  %3386 = vmatpush3.bf16.msra.mxu0 %v4221_v45  ;;  %v3391_v45 = vpack.c.bf16 %v714_v37, %v707_v6  ;;  %v4365_v16 = vsub.f32 %v238_v24, %v4318_v28  ;;  %v723_v4 = vand.u32 4294901760, %v722_v60  ;;  %v410_v24 = vand.u32 4294901760, %v4308_v25 }
  0x88   : > { %5025 = vst [vmem:[#allocation35_spill] sm:$0xff] %v4352_v17  ;;  %2810 = vmatprep.mubr.f32.mxu1 %v380_v21  ;;  %3050 = vmatprep.mubr.f32.mxu0 %v5028_v22  ;;  %v742_v21 = vand.u32 4294901760, %v4360_v50  ;;  %v420_v37 = vand.u32 4294901760, %v419_v53  ;;  %v4375_v0 = vand.u32 4294901760, %v241_v8  ;;  %v736_v6 = vsub.f32 %v4343_v3, %v735_v39 }
  0x89   : > { %5029 = vst [vmem:[#allocation37_spill] sm:$0xff] %v4365_v16  ;;  %3292 = vmatprep.subr.bf16.mxu1 %v3291_v52  ;;  %3388 = vmatprep.subr.bf16.mxu0 %v3387_v26  ;;  %v5033_v13 = vand.u32 4294901760, %v4186_v2  ;;  %v5034_v60 = vand.u32 4294901760, %v4300_v55  ;;  %v4387_v25 = vsub.f32 %v240_v41, %v4354_v61  ;;  %v440_v22 = vand.u32 4294901760, %v4349_v15  ;;  %v244_v2 = vld [vmem:[%s4026_s12 + $0x88] sm:$0xff] }
  0x8a   : > { %2811 = vmatmul.mubr.f32.gmra.mrb[2].mxu1 %v390_v51  ;;  %3051 = vmatmul.mubr.f32.gmra.mrb[2].mxu0 %v5031_v12  ;;  %5032 = vst [vmem:[#allocation39_spill] sm:$0xff] %v4375_v0  ;;  %v743_v53 = vsub.f32 %v4360_v50, %v742_v21  ;;  %v3299_v41 = vpack.c.bf16 %v730_v23, %v723_v4  ;;  %v5036_v57 = vand.u32 4294901760, %v4259_v36  ;;  %v245_v12 = vld [vmem:[%s4026_s12 + $0x90] sm:$0xff]  ;;  %v5039_v61 = vand.u32 4294901760, %v4099_v30 }
  0x8b   : > { %2813 = vmatprep.mubr.f32.mxu1 %v400_v1  ;;  %3053 = vmatprep.mubr.f32.mxu0 %v5033_v13  ;;  %v4383_v51 = vsub.f32 %v4300_v55, %v5034_v60  ;;  %5035 = vst [vmem:[#allocation40_spill] sm:$0xff] %v4387_v25  ;;  %v430_v1 = vand.u32 4294901760, %v4337_v10  ;;  %v243_v60 = vld [vmem:[%s4026_s12 + $0x80] sm:$0xff]  ;;  %v5038_v10 = vand.u32 4294901760, %v4231_v9  ;;  %v4404_v15 = vsub.f32 %v241_v8, %v4375_v0 }
  0x8c   : > { %3294 = vmatpush3.bf16.msra.mxu1 %v3291_v52  ;;  %3390 = vmatpush3.bf16.msra.mxu0 %v3387_v26  ;;  %v3395_v52 = vpack.c.bf16 %v5037_v62, %v5036_v57  ;;  %v737_v26 = vand.u32 4294901760, %v736_v6  ;;  %v744_v56 = vand.u32 4294901760, %v743_v53  ;;  %v4406_v13 = vand.u32 4294901760, %v242_v63 }
  0x8d   : > { %3296 = vmatprep.subr.bf16.mxu1 %v3295_v27  ;;  %3392 = vmatprep.subr.bf16.mxu0 %v3391_v45  ;;  %v4412_v4 = vsub.f32 %v4099_v30, %v5039_v61  ;;  %v5040_v23 = vand.u32 4294901760, %v4101_v31  ;;  %v5042_v8 = vand.u32 4294901760, %v4352_v17  ;;  %v4425_v53 = vand.u32 4294901760, %v243_v60 }
  0x8e   : > { %2814 = vmatmul.mubr.f32.gmra.mrb[4].mxu1 %v410_v24  ;;  %3054 = vmatmul.mubr.f32.gmra.mrb[4].mxu0 %v5038_v10  ;;  %v5041_v24 = vand.u32 4294901760, %v4262_v7  ;;  %v4427_v30 = vand.u32 4294901760, %v244_v2  ;;  %v450_v61 = vand.u32 4294901760, %v4383_v51  ;;  %v3303_v57 = vpack.c.bf16 %v744_v56, %v737_v26 }
  0x8f   : > { %v4417_v62 = vsub.f32 %v4101_v31, %v5040_v23  ;;  %2816 = vmatprep.mubr.f32.mxu1 %v420_v37  ;;  %v459_v6 = vsub.f32 %v4352_v17, %v5042_v8  ;;  %v5043_v31 = vand.u32 4294901760, %v4365_v16  ;;  %v749_v10 = vand.u32 4294901760, %v4412_v4 }
  0x90   : > { %3056 = vmatprep.mubr.f32.mxu0 %v5041_v24  ;;  %3298 = vmatpush3.bf16.msra.mxu1 %v3295_v27  ;;  %v5044_v24 = vand.u32 4294901760, %v4368_v47  ;;  %v3399_v7 = vpack.c.bf16 %v742_v21, %v735_v39  ;;  %v4440_v51 = vand.u32 4294901760, %v245_v12  ;;  %v5045_v27 = vand.u32 4294901760, %v4265_v29 }
  0x91   : > { %3394 = vmatpush3.bf16.msra.mxu0 %v3391_v45  ;;  %v469_v37 = vsub.f32 %v4365_v16, %v5043_v31  ;;  %v756_v23 = vand.u32 4294901760, %v4417_v62  ;;  %3300 = vmatprep.subr.bf16.mxu1 %v3299_v41  ;;  %v246_v45 = vld [vmem:[%s4026_s12 + $0x98] sm:$0xff]  ;;  %v4447_v9 = vsub.f32 %v242_v63, %v4406_v13  ;;  %v5046_v56 = vand.u32 4294901760, %v4284_v5 }
  0x92   : > { %v4438_v8 = vsub.f32 %v4368_v47, %v5044_v24  ;;  %3396 = vmatprep.subr.bf16.mxu0 %v3395_v52  ;;  %2817 = vmatmul.mubr.f32.gmra.mrb[6].mxu1 %v430_v1  ;;  %v750_v24 = vsub.f32 %v4412_v4, %v749_v10  ;;  %v460_v39 = vand.u32 4294901760, %v459_v6  ;;  %v5047_v21 = vand.u32 4294901760, %v4387_v25 }
  0x93   : > { %3057 = vmatmul.mubr.f32.gmra.mrb[6].mxu0 %v5045_v27  ;;  %v757_v0 = vsub.f32 %v4417_v62, %v756_v23  ;;  %2819 = vmatprep.mubr.f32.mxu1 %v440_v22  ;;  %v4459_v26 = vsub.f32 %v243_v60, %v4425_v53  ;;  %v4462_v63 = vsub.f32 %v244_v2, %v4427_v30  ;;  %v4464_v27 = vand.u32 4294901760, %v246_v45  ;;  %v247_v22 = vld [vmem:[%s4026_s12 + $0xa0] sm:$0xff]  ;;  %v248_v2 = vld [vmem:[%s4026_s12 + $0xa8] sm:$0xff] }
  0x94   : > { %3059 = vmatprep.mubr.f32.mxu0 %v5046_v56  ;;  %v4456_v1 = vsub.f32 %v4387_v25, %v5047_v21  ;;  %3302 = vmatpush3.bf16.msra.mxu1 %v3299_v41  ;;  %v751_v31 = vand.u32 4294901760, %v750_v24  ;;  %v5048_v6 = vand.u32 4294901760, %v4112_v38  ;;  %v470_v21 = vand.u32 4294901760, %v469_v37 }
  0x95   : > { %3398 = vmatpush3.bf16.msra.mxu0 %v3395_v52  ;;  %v758_v56 = vand.u32 4294901760, %v757_v0  ;;  %3304 = vmatprep.subr.bf16.mxu1 %v3303_v57  ;;  %v4473_v60 = vsub.f32 %v245_v12, %v4440_v51  ;;  %v3403_v41 = vpack.c.bf16 %v756_v23, %v749_v10  ;;  %v5049_v52 = vand.u32 4294901760, %v4124_v42 }
  0x96   : > { %v4470_v5 = vsub.f32 %v4112_v38, %v5048_v6  ;;  %3400 = vmatprep.subr.bf16.mxu0 %v3399_v7  ;;  %2820 = vmatmul.mubr.f32.gmra.mrb[8].mxu1 %v450_v61  ;;  %v5050_v0 = vand.u32 4294901760, %v4300_v55  ;;  %v5051_v38 = vand.u32 4294901760, %v4404_v15  ;;  %v5052_v10 = vand.u32 4294901760, %v4352_v17 }
  0x97   : > { %v4479_v29 = vsub.f32 %v4124_v42, %v5049_v52  ;;  %v3307_v6 = vpack.c.bf16 %v758_v56, %v751_v31  ;;  %2822 = vmatprep.mubr.f32.mxu1 %v460_v39  ;;  %v480_v42 = vand.u32 4294901760, %v4438_v8  ;;  %v4492_v23 = vand.u32 4294901760, %v247_v22  ;;  %v249_v52 = vld [vmem:[%s4026_s12 + $0xb0] sm:$0xff] }
  0x98   : > { %3060 = vmatmul.mubr.f32.gmra.mrb[8].mxu0 %v5050_v0  ;;  %v499_v37 = vsub.f32 %v4404_v15, %v5051_v38  ;;  %v763_v12 = vand.u32 4294901760, %v4470_v5  ;;  %3306 = vmatpush3.bf16.msra.mxu1 %v3303_v57  ;;  %v4498_v31 = vsub.f32 %v246_v45, %v4464_v27  ;;  %v4500_v39 = vand.u32 4294901760, %v248_v2 }
  0x99   : > { %3062 = vmatprep.mubr.f32.mxu0 %v5052_v10  ;;  %5053 = vst [vmem:[#allocation41_spill] sm:$0xff] %v4492_v23  ;;  %v770_v0 = vand.u32 4294901760, %v4479_v29  ;;  %3402 = vmatpush3.bf16.msra.mxu0 %v3399_v7  ;;  %v490_v8 = vand.u32 4294901760, %v4456_v1  ;;  %v5055_v57 = vand.u32 4294901760, %v4365_v16  ;;  %v5056_v45 = vand.u32 4294901760, %v4447_v9  ;;  %v250_v1 = vld [vmem:[%s4026_s12 + $0xb8] sm:$0xff] }
  0x9a   : > { %5054 = vst [vmem:[#allocation42_spill] sm:$0xff] %v4500_v39  ;;  %v764_v56 = vsub.f32 %v4470_v5, %v763_v12  ;;  %3308 = vmatprep.subr.bf16.mxu1 %v3307_v6  ;;  %3404 = vmatprep.subr.bf16.mxu0 %v3403_v41  ;;  %v500_v7 = vand.u32 4294901760, %v499_v37  ;;  %v4511_v17 = vand.u32 4294901760, %v249_v52  ;;  %v5058_v10 = vand.u32 4294901760, %v4368_v47 }
  0x9b   : > { %v771_v61 = vsub.f32 %v4479_v29, %v770_v0  ;;  %v3407_v24 = vpack.c.bf16 %v770_v0, %v763_v12  ;;  %2823 = vmatmul.mubr.f32.gmra.mrb[10].mxu1 %v470_v21  ;;  %v509_v38 = vsub.f32 %v4447_v9, %v5056_v45  ;;  %v5059_v12 = vand.u32 4294901760, %v4459_v26 }
  0x9c   : > { %3063 = vmatmul.mubr.f32.gmra.mrb[10].mxu0 %v5055_v57  ;;  %5057 = vst [vmem:[#allocation43_spill] sm:$0xff] %v4511_v17  ;;  %v765_v55 = vand.u32 4294901760, %v764_v56  ;;  %2825 = vmatprep.mubr.f32.mxu1 %v480_v42  ;;  %v4520_v0 = vsub.f32 %v247_v22, %v4492_v23  ;;  %v5060_v57 = vand.u32 4294901760, %v4134_v48  ;;  %v5061_v16 = vand.u32 4294901760, %v4462_v63 }
  0x9d   : > { %3065 = vmatprep.mubr.f32.mxu0 %v5058_v10  ;;  %v519_v21 = vsub.f32 %v4459_v26, %v5059_v12  ;;  %v772_v37 = vand.u32 4294901760, %v771_v61  ;;  %v4530_v10 = vsub.f32 %v248_v2, %v4500_v39  ;;  %3310 = vmatpush3.bf16.msra.mxu1 %v3307_v6  ;;  %v251_v12 = vld [vmem:[%s4026_s12 + $0xc0] sm:$0xff]  ;;  %v5062_v22 = vand.u32 4294901760, %v4136_v49 }
  0x9e   : > { %v776_v45 = vsub.f32 %v4134_v48, %v5060_v57  ;;  %v529_v56 = vsub.f32 %v4462_v63, %v5061_v16  ;;  %3406 = vmatpush3.bf16.msra.mxu0 %v3403_v41  ;;  %v5063_v47 = vand.u32 4294901760, %v4473_v60  ;;  %v4539_v57 = vand.u32 4294901760, %v250_v1 }
  0x9f   : > { %v783_v61 = vsub.f32 %v4136_v49, %v5062_v22  ;;  %v3311_v16 = vpack.c.bf16 %v772_v37, %v765_v55  ;;  %3408 = vmatprep.subr.bf16.mxu0 %v3407_v24  ;;  %2826 = vmatmul.mubr.f32.gmra.mrb[12].mxu1 %v490_v8  ;;  %v5064_v2 = vand.u32 4294901760, %v4387_v25  ;;  %v510_v41 = vand.u32 4294901760, %v509_v38  ;;  %v252_v37 = vld [vmem:[%s4026_s12 + $0xc8] sm:$0xff]  ;;  %v253_v38 = vld [vmem:[%s4026_s12 + $0xd0] sm:$0xff] }
  0xa0   : > { %v539_v48 = vsub.f32 %v4473_v60, %v5063_v47  ;;  %v777_v42 = vand.u32 4294901760, %v776_v45  ;;  %v4544_v6 = vsub.f32 %v249_v52, %v4511_v17  ;;  %2828 = vmatprep.mubr.f32.mxu1 %v500_v7  ;;  %v5065_v22 = vand.u32 4294901760, %v4404_v15 }
  0xa1   : > { %3066 = vmatmul.mubr.f32.gmra.mrb[12].mxu0 %v5064_v2  ;;  %v784_v49 = vand.u32 4294901760, %v783_v61  ;;  %v520_v47 = vand.u32 4294901760, %v519_v21  ;;  %v4549_v55 = vand.u32 4294901760, %v251_v12  ;;  %v530_v23 = vand.u32 4294901760, %v529_v56  ;;  %3312 = vmatprep.subr.bf16.mxu1 %v3311_v16 }
  0xa2   : > { %3068 = vmatprep.mubr.f32.mxu0 %v5065_v22  ;;  %v778_v8 = vsub.f32 %v776_v45, %v777_v42  ;;  %3410 = vmatpush3.bf16.msra.mxu0 %v3407_v24  ;;  %v540_v17 = vand.u32 4294901760, %v539_v48  ;;  %v5066_v7 = vand.u32 4294901760, %v4498_v31  ;;  %v4558_v22 = vsub.f32 %v250_v1, %v4539_v57 }
  0xa3   : > { %v785_v52 = vsub.f32 %v783_v61, %v784_v49  ;;  %v3411_v2 = vpack.c.bf16 %v784_v49, %v777_v42  ;;  %3314 = vmatpush3.bf16.msra.mxu1 %v3311_v16  ;;  %v5068_v56 = vand.u32 4294901760, %v4447_v9  ;;  %v4981_v24 = vand.u32 4294901760, %v4544_v6 }
  0xa4   : > { %v549_v21 = vsub.f32 %v4498_v31, %v5066_v7  ;;  %5067 = vst [vmem:[#allocation44_spill] sm:$0xff] %v4558_v22  ;;  %v779_v39 = vand.u32 4294901760, %v778_v8  ;;  %2829 = vmatmul.mubr.f32.gmra.mrb[14].mxu1 %v510_v41  ;;  %v4563_v25 = vand.u32 4294901760, %v252_v37  ;;  %v4567_v48 = vpack.c.bf16 %v4168_v59, %v4163_v58  ;;  %v254_v7 = vld [vmem:[%s4026_s12 + $0xd8] sm:$0xff] }
  0xa5   : > { %3069 = vmatmul.mubr.f32.gmra.mrb[14].mxu0 %v5068_v56  ;;  %v786_v42 = vand.u32 4294901760, %v785_v52  ;;  %2831 = vmatprep.mubr.f32.mxu1 %v520_v47  ;;  %v5069_v1 = vand.u32 4294901760, %v4459_v26  ;;  %v5070_v16 = vand.u32 4294901760, %v4520_v0  ;;  %v4575_v49 = vsub.f32 %v251_v12, %v4549_v55  ;;  %v255_v47 = vld [vmem:[%s4026_s12 + $0xe0] sm:$0xff] }
  0xa6   : > { %v4577_v8 = vand.u32 4294901760, %v253_v38  ;;  %v4582_v52 = vpack.c.bf16 %v4214_v35, %v4209_v33  ;;  %v5072_v58 = vand.u32 4294901760, %v4530_v10  ;;  %3412 = vmatprep.subr.bf16.mxu0 %v3411_v2  ;;  %v4594_v12 = vpack.c.bf16 %v4360_v50, %v4343_v3 }
  0xa7   : > { %3071 = vmatprep.mubr.f32.mxu0 %v5069_v1  ;;  %v559_v41 = vsub.f32 %v4520_v0, %v5070_v16  ;;  %5071 = vst [vmem:[#allocation45_spill] sm:$0xff] %v4575_v49  ;;  %v3315_v56 = vpack.c.bf16 %v786_v42, %v779_v39  ;;  %v4590_v1 = vpack.c.bf16 %v4272_v32, %v4259_v36  ;;  %v588_v16 = vand.u32 4294901760, %v4558_v22 }
  0xa8   : > { %v569_v59 = vsub.f32 %v4530_v10, %v5072_v58  ;;  %3414 = vmatpush3.bf16.msra.mxu0 %v3411_v2  ;;  %v4599_v33 = vpack.c.bf16 %v4417_v62, %v4412_v4  ;;  %v4603_v35 = vpack.c.bf16 %v4479_v29, %v4470_v5  ;;  %v4605_v39 = vpack.c.bf16 %v783_v61, %v776_v45  ;;  %v256_v61 = vld [vmem:[%s4026_s12 + $0xe8] sm:$0xff]  ;;  %v257_v2 = vld [vmem:[%s4026_s12 + $0xf0] sm:$0xff] }
  0xa9   : > { %2832 = vmatmul.mubr.f32.gmra.mrb[16].mxu1 %v530_v23  ;;  %v5073_v36 = vand.u32 4294901760, %v4462_v63  ;;  %v550_v50 = vand.u32 4294901760, %v549_v21  ;;  %v579_v3 = vsub.f32 %v4544_v6, %v4981_v24  ;;  %v4613_v32 = vsub.f32 %v252_v37, %v4563_v25  ;;  %3316 = vmatprep.subr.bf16.mxu1 %v3315_v56 }
  0xaa   : > { %v4615_v4 = vand.u32 4294901760, %v254_v7  ;;  %2834 = vmatprep.mubr.f32.mxu1 %v540_v17  ;;  %v5075_v29 = vand.u32 4294901760, %v4473_v60  ;;  %v560_v5 = vand.u32 4294901760, %v559_v41  ;;  %v598_v62 = vand.u32 4294901760, %v4575_v49  ;;  %3416 = vmatprep.subr.bf16.mxu0 %v4047_v11 }
  0xab   : > { %3072 = vmatmul.mubr.f32.gmra.mrb[16].mxu0 %v5073_v36  ;;  %5074 = vst [vmem:[#allocation46_spill] sm:$0xff] %v4613_v32  ;;  %v4621_v23 = vsub.f32 %v253_v38, %v4577_v8  ;;  %v4623_v45 = vand.u32 4294901760, %v255_v47  ;;  %v4629_v37 = vpack.c.bf16 %v4126_v43, %v4114_v40  ;;  %v570_v17 = vand.u32 4294901760, %v569_v59  ;;  %3318 = vmatpush3.bf16.msra.mxu1 %v3315_v56 }
  0xac   : > { %3074 = vmatprep.mubr.f32.mxu0 %v5075_v29  ;;  %v589_v21 = vsub.f32 %v4558_v22, %v588_v16  ;;  %v5077_v38 = vand.u32 4294901760, %v4498_v31  ;;  %v580_v42 = vand.u32 4294901760, %v579_v3  ;;  %v608_v41 = vand.u32 4294901760, %v4613_v32  ;;  %v258_v3 = vld [vmem:[%s4026_s12 + $0xf8] sm:$0xff] }
  0xad   : > { %5076 = vst [vmem:[#allocation47_spill] sm:$0xff] %v4621_v23  ;;  %2835 = vmatmul.mubr.f32.gmra.mrb[18].mxu1 %v550_v50  ;;  %v4637_v58 = vsub.f32 %v254_v7, %v4615_v4  ;;  %v4639_v36 = vand.u32 4294901760, %v256_v61  ;;  %v5078_v40 = vand.u32 4294901760, %v4520_v0  ;;  %v599_v43 = vsub.f32 %v4575_v49, %v598_v62  ;;  %3320 = vmatprep.subr.bf16.mxu1 %v4629_v37 }
  0xae   : > { %2837 = vmatprep.mubr.f32.mxu1 %v560_v5  ;;  %v618_v59 = vand.u32 4294901760, %v4621_v23  ;;  %v4646_v56 = vsub.f32 %v255_v47, %v4623_v45  ;;  %v4648_v50 = vand.u32 4294901760, %v257_v2  ;;  %v590_v7 = vand.u32 4294901760, %v589_v21 }
  0xaf   : > { %3075 = vmatmul.mubr.f32.gmra.mrb[18].mxu0 %v5077_v38  ;;  %v5079_v29 = vand.u32 4294901760, %v4530_v10  ;;  %v609_v5 = vsub.f32 %v4613_v32, %v608_v41  ;;  %v628_v38 = vand.u32 4294901760, %v4637_v58  ;;  %v4659_v24 = vand.u32 4294901760, %v258_v3 }
  0xb0   : > { %3077 = vmatprep.mubr.f32.mxu0 %v5078_v40  ;;  %v4657_v40 = vsub.f32 %v256_v61, %v4639_v36  ;;  %v5080_v47 = vand.u32 4294901760, %v4544_v6  ;;  %v600_v49 = vand.u32 4294901760, %v599_v43  ;;  %v619_v21 = vsub.f32 %v4621_v23, %v618_v59 }
  0xb1   : > { %2838 = vmatmul.mubr.f32.gmra.mrb[20].mxu1 %v570_v17  ;;  %v638_v17 = vand.u32 4294901760, %v4646_v56  ;;  %v610_v32 = vand.u32 4294901760, %v609_v5  ;;  %v629_v61 = vsub.f32 %v4637_v58, %v628_v38 }
  0xb2   : > { %2840 = vmatprep.mubr.f32.mxu1 %v580_v42  ;;  %v648_v22 = vand.u32 4294901760, %v4657_v40  ;;  %v4671_v42 = vsub.f32 %v258_v3, %v4659_v24  ;;  %v620_v43 = vand.u32 4294901760, %v619_v21 }
  0xb3   : > { %3078 = vmatmul.mubr.f32.gmra.mrb[20].mxu0 %v5079_v29  ;;  %v4666_v29 = vsub.f32 %v257_v2, %v4648_v50  ;;  %v630_v2 = vand.u32 4294901760, %v629_v61  ;;  %v5098_v61 = vld [vmem:[#allocation17_spill] sm:$0xff] }
  0xb4   : > { %3080 = vmatprep.mubr.f32.mxu0 %v5080_v47  ;;  %v639_v47 = vsub.f32 %v4646_v56, %v638_v17 }
  0xb5   : > { %2841 = vmatmul.mubr.f32.gmra.mrb[22].mxu1 %v590_v7  ;;  %v658_v23 = vand.u32 4294901760, %v4666_v29  ;;  %v668_v7 = vand.u32 4294901760, %v4671_v42 }
  0xb6   : > { %2843 = vmatprep.mubr.f32.mxu1 %v600_v49  ;;  %v640_v5 = vand.u32 4294901760, %v639_v47  ;;  %v5100_v47 = vld [vmem:[#allocation20_spill] sm:$0xff] }
  0xb7   : > { %3081 = vmatmul.mubr.f32.gmra.mrb[22].mxu0 %v588_v16  ;;  %v649_v16 = vsub.f32 %v4657_v40, %v648_v22  ;;  %v659_v3 = vsub.f32 %v4666_v29, %v658_v23 }
  0xb8   : > { %3083 = vmatprep.mubr.f32.mxu0 %v598_v62  ;;  %v669_v62 = vsub.f32 %v4671_v42, %v668_v7 }
  0xb9   : > { %2844 = vmatmul.mubr.f32.gmra.mrb[24].mxu1 %v610_v32  ;;  %v650_v49 = vand.u32 4294901760, %v649_v16  ;;  %v660_v21 = vand.u32 4294901760, %v659_v3  ;;  %v5102_v16 = vld [vmem:[#allocation27_spill] sm:$0xff]  ;;  %v5110_v3 = vld [vmem:[#allocation40_spill] sm:$0xff] }
  0xba   : > { %2846 = vmatprep.mubr.f32.mxu1 %v620_v43  ;;  %v670_v32 = vand.u32 4294901760, %v669_v62  ;;  %v5099_v43 = vld [vmem:[#allocation19_spill] sm:$0xff] }
  0xbb   : > { %3084 = vmatmul.mubr.f32.gmra.mrb[24].mxu0 %v608_v41  ;;  %v5091_v41 = vld [vmem:[#allocation36_spill] sm:$0xff] }
  0xbc   : > { %3086 = vmatprep.mubr.f32.mxu0 %v618_v59  ;;  %v5092_v59 = vld [vmem:[#allocation39_spill] sm:$0xff] }
  0xbd   : > { %2847 = vmatmul.mubr.f32.gmra.mrb[26].mxu1 %v630_v2  ;;  %v5101_v2 = vld [vmem:[#allocation22_spill] sm:$0xff] }
  0xbe   : > { %2849 = vmatprep.mubr.f32.mxu1 %v640_v5  ;;  %v5109_v5 = vld [vmem:[#allocation38_spill] sm:$0xff] }
  0xbf   : > { %3087 = vmatmul.mubr.f32.gmra.mrb[26].mxu0 %v628_v38  ;;  %v5095_v38 = vld [vmem:[#allocation42_spill] sm:$0xff] }
  0xc0   : > { %3089 = vmatprep.mubr.f32.mxu0 %v638_v17  ;;  %v5097_v17 = vld [vmem:[#allocation14_spill] sm:$0xff] }
  0xc1   : > { %2850 = vmatmul.mubr.f32.gmra.mrb[28].mxu1 %v650_v49 }
  0xc2   : > { %2852 = vmatprep.mubr.f32.mxu1 %v660_v21 }
  0xc3   : > { %3090 = vmatmul.mubr.f32.gmra.mrb[28].mxu0 %v648_v22  ;;  %v5082_v22 = vld [vmem:[#allocation25_spill] sm:$0xff] }
  0xc4   : > { %3092 = vmatprep.mubr.f32.mxu0 %v658_v23  ;;  %v5085_v23 = vld [vmem:[#allocation28_spill] sm:$0xff] }
  0xc5   : > { %2853 = vmatmul.mubr.f32.gmra.mrb[30].mxu1 %v670_v32 }
  0xc6   : > { %2887 = vmatprep.mubr.f32.mxu1 %v4066_v18 }
  0xc7   : > { %3093 = vmatmul.mubr.f32.gmra.mrb[30].mxu0 %v668_v7  ;;  %v5108_v7 = vld [vmem:[#allocation37_spill] sm:$0xff] }
  0xc8   : > { %3127 = vmatprep.mubr.f32.mxu0 %v4066_v18 }
  0xc9   : > { %2888 = vmatmul.mubr.f32.vlgmr.msra.gmra.mrb[0].mxu1 %v4105_v34 }
  0xca   : > { %3322 = vmatpush3.bf16.msra.mxu1 %v4629_v37  ;;  %2890 = vmatprep.mubr.f32.mxu1 %v4128_v44  ;;  %v5088_v37 = vld [vmem:[#allocation34_spill] sm:$0xff] }
  0xcb   : > { %3128 = vmatmul.mubr.f32.vlgmr.msra.gmra.mrb[0].mxu0 %v4105_v34  ;;  %3324 = vmatprep.subr.bf16.mxu1 %v4567_v48 }
  0xcc   : > { %3418 = vmatpush3.bf16.msra.mxu0 %v4047_v11  ;;  %3130 = vmatprep.mubr.f32.mxu0 %v4128_v44  ;;  %v5081_v11 = vld [vmem:[#allocation23_spill] sm:$0xff] }
  0xcd   : > { %3420 = vmatprep.subr.bf16.mxu0 %v4055_v14  ;;  %2891 = vmatmul.mubr.f32.gmra.mrb[2].mxu1 %v4131_v46 }
  0xce   : > { %2893 = vmatprep.mubr.f32.mxu1 %v4151_v54  ;;  %3326 = vmatpush3.bf16.msra.mxu1 %v4567_v48  ;;  %v5083_v48 = vld [vmem:[#allocation15_spill] sm:$0xff] }
  0xcf   : > { %3131 = vmatmul.mubr.f32.gmra.mrb[2].mxu0 %v4131_v46  ;;  %3328 = vmatprep.subr.bf16.mxu1 %v4582_v52 }
  0xd0   : > { %3133 = vmatprep.mubr.f32.mxu0 %v4151_v54  ;;  %3422 = vmatpush3.bf16.msra.mxu0 %v4055_v14  ;;  %v5084_v14 = vld [vmem:[#allocation26_spill] sm:$0xff] }
  0xd1   : > { %3424 = vmatprep.subr.bf16.mxu0 %v4074_v19  ;;  %2894 = vmatmul.mubr.f32.gmra.mrb[4].mxu1 %v5081_v11 }
  0xd2   : > { %2896 = vmatprep.mubr.f32.mxu1 %v5082_v22  ;;  %3330 = vmatpush3.bf16.msra.mxu1 %v4582_v52  ;;  %v5086_v52 = vld [vmem:[#allocation16_spill] sm:$0xff] }
  0xd3   : > { %3134 = vmatmul.mubr.f32.gmra.mrb[4].mxu0 %v5081_v11  ;;  %3332 = vmatprep.subr.bf16.mxu1 %v4590_v1 }
  0xd4   : > { %3136 = vmatprep.mubr.f32.mxu0 %v5082_v22  ;;  %3426 = vmatpush3.bf16.msra.mxu0 %v4074_v19  ;;  %v5087_v19 = vld [vmem:[#allocation31_spill] sm:$0xff] }
  0xd5   : > { %3428 = vmatprep.subr.bf16.mxu0 %v5083_v48  ;;  %2897 = vmatmul.mubr.f32.gmra.mrb[6].mxu1 %v5084_v14 }
  0xd6   : > { %2899 = vmatprep.mubr.f32.mxu1 %v5085_v23  ;;  %3334 = vmatpush3.bf16.msra.mxu1 %v4590_v1  ;;  %v5089_v1 = vld [vmem:[#allocation18_spill] sm:$0xff] }
  0xd7   : > { %3137 = vmatmul.mubr.f32.gmra.mrb[6].mxu0 %v5084_v14  ;;  %3336 = vmatprep.subr.bf16.mxu1 %v4594_v12 }
  0xd8   : > { %3139 = vmatprep.mubr.f32.mxu0 %v5085_v23  ;;  %3430 = vmatpush3.bf16.msra.mxu0 %v5083_v48 }
  0xd9   : > { %3432 = vmatprep.subr.bf16.mxu0 %v5086_v52  ;;  %2900 = vmatmul.mubr.f32.gmra.mrb[8].mxu1 %v5087_v19 }
  0xda   : > { %2902 = vmatprep.mubr.f32.mxu1 %v5088_v37  ;;  %3338 = vmatpush3.bf16.msra.mxu1 %v4594_v12  ;;  %v5090_v12 = vld [vmem:[#allocation21_spill] sm:$0xff] }
  0xdb   : > { %3140 = vmatmul.mubr.f32.gmra.mrb[8].mxu0 %v5087_v19  ;;  %3340 = vmatprep.subr.bf16.mxu1 %v4599_v33 }
  0xdc   : > { %3142 = vmatprep.mubr.f32.mxu0 %v5088_v37  ;;  %3434 = vmatpush3.bf16.msra.mxu0 %v5086_v52 }
  0xdd   : > { %3436 = vmatprep.subr.bf16.mxu0 %v5089_v1  ;;  %2903 = vmatmul.mubr.f32.gmra.mrb[10].mxu1 %v4318_v28 }
  0xde   : > { %2905 = vmatprep.mubr.f32.mxu1 %v4320_v20  ;;  %3342 = vmatpush3.bf16.msra.mxu1 %v4599_v33  ;;  %v5093_v33 = vld [vmem:[#allocation24_spill] sm:$0xff] }
  0xdf   : > { %3143 = vmatmul.mubr.f32.gmra.mrb[10].mxu0 %v4318_v28  ;;  %3344 = vmatprep.subr.bf16.mxu1 %v4603_v35 }
  0xe0   : > { %3145 = vmatprep.mubr.f32.mxu0 %v4320_v20  ;;  %3438 = vmatpush3.bf16.msra.mxu0 %v5089_v1 }
  0xe1   : > { %3440 = vmatprep.subr.bf16.mxu0 %v5090_v12  ;;  %2906 = vmatmul.mubr.f32.gmra.mrb[12].mxu1 %v5091_v41 }
  0xe2   : > { %2908 = vmatprep.mubr.f32.mxu1 %v5092_v59  ;;  %3346 = vmatpush3.bf16.msra.mxu1 %v4603_v35  ;;  %v5094_v35 = vld [vmem:[#allocation41_spill] sm:$0xff] }
  0xe3   : > { %3146 = vmatmul.mubr.f32.gmra.mrb[12].mxu0 %v5091_v41  ;;  %3348 = vmatprep.subr.bf16.mxu1 %v4605_v39 }
  0xe4   : > { %3148 = vmatprep.mubr.f32.mxu0 %v5092_v59  ;;  %3442 = vmatpush3.bf16.msra.mxu0 %v5090_v12 }
  0xe5   : > { %3444 = vmatprep.subr.bf16.mxu0 %v5093_v33  ;;  %2909 = vmatmul.mubr.f32.gmra.mrb[14].mxu1 %v4406_v13 }
  0xe6   : > { %2911 = vmatprep.mubr.f32.mxu1 %v4425_v53  ;;  %3350 = vmatpush3.bf16.msra.mxu1 %v4605_v39  ;;  %v5096_v39 = vld [vmem:[#allocation43_spill] sm:$0xff] }
  0xe7   : > { %3149 = vmatmul.mubr.f32.gmra.mrb[14].mxu0 %v4406_v13 }
  0xe8   : > { %3151 = vmatprep.mubr.f32.mxu0 %v4425_v53  ;;  %3446 = vmatpush3.bf16.msra.mxu0 %v5093_v33 }
  0xe9   : > { %2912 = vmatmul.mubr.f32.gmra.mrb[16].mxu1 %v4427_v30 }
  0xea   : > { %2914 = vmatprep.mubr.f32.mxu1 %v4440_v51 }
  0xeb   : > { %3152 = vmatmul.mubr.f32.gmra.mrb[16].mxu0 %v4427_v30 }
  0xec   : > { %3154 = vmatprep.mubr.f32.mxu0 %v4440_v51 }
  0xed   : > { %2915 = vmatmul.mubr.f32.gmra.mrb[18].mxu1 %v4464_v27 }
  0xee   : > { %2917 = vmatprep.mubr.f32.mxu1 %v5094_v35 }
  0xef   : > { %3155 = vmatmul.mubr.f32.gmra.mrb[18].mxu0 %v4464_v27 }
  0xf0   : > { %3157 = vmatprep.mubr.f32.mxu0 %v5094_v35 }
  0xf1   : > { %2918 = vmatmul.mubr.f32.gmra.mrb[20].mxu1 %v5095_v38 }
  0xf2   : > { %2920 = vmatprep.mubr.f32.mxu1 %v5096_v39 }
  0xf3   : > { %3158 = vmatmul.mubr.f32.gmra.mrb[20].mxu0 %v5095_v38 }
  0xf4   : > { %3160 = vmatprep.mubr.f32.mxu0 %v5096_v39 }
  0xf5   : > { %2921 = vmatmul.mubr.f32.gmra.mrb[22].mxu1 %v4539_v57 }
  0xf6   : > { %2923 = vmatprep.mubr.f32.mxu1 %v4549_v55 }
  0xf7   : > { %3161 = vmatmul.mubr.f32.gmra.mrb[22].mxu0 %v4539_v57 }
  0xf8   : > { %3163 = vmatprep.mubr.f32.mxu0 %v4549_v55 }
  0xf9   : > { %2924 = vmatmul.mubr.f32.gmra.mrb[24].mxu1 %v4563_v25 }
  0xfa   : > { %2926 = vmatprep.mubr.f32.mxu1 %v4577_v8 }
  0xfb   : > { %3164 = vmatmul.mubr.f32.gmra.mrb[24].mxu0 %v4563_v25 }
  0xfc   : > { %3166 = vmatprep.mubr.f32.mxu0 %v4577_v8 }
  0xfd   : > { %2927 = vmatmul.mubr.f32.gmra.mrb[26].mxu1 %v4615_v4 }
  0xfe   : > { %2929 = vmatprep.mubr.f32.mxu1 %v4623_v45 }
  0xff   : > { %3167 = vmatmul.mubr.f32.gmra.mrb[26].mxu0 %v4615_v4 }
 0x100   : > { %3169 = vmatprep.mubr.f32.mxu0 %v4623_v45 }
 0x101   : > { %2930 = vmatmul.mubr.f32.gmra.mrb[28].mxu1 %v4639_v36 }
 0x102   : > { %2932 = vmatprep.mubr.f32.mxu1 %v4648_v50 }
 0x103   : > { %3170 = vmatmul.mubr.f32.gmra.mrb[28].mxu0 %v4639_v36 }
 0x104   : > { %3172 = vmatprep.mubr.f32.mxu0 %v4648_v50 }
 0x105   : > { %2933 = vmatmul.mubr.f32.gmra.mrb[30].mxu1 %v4659_v24 }
 0x106   : > { %2967 = vmatprep.mubr.f32.mxu1 %v5097_v17 }
 0x107   : > { %3173 = vmatmul.mubr.f32.gmra.mrb[30].mxu0 %v4659_v24 }
 0x108   : > { %3207 = vmatprep.mubr.f32.mxu0 %v4066_v18  ;;  %v5103_v18 = vld [vmem:[#allocation29_spill] sm:$0xff] }
 0x109   : > { %2968 = vmatmul.mubr.f32.vlgmr.msra.gmra.mrb[0].mxu1 %v5098_v61 }
 0x10a   : > { %2970 = vmatprep.mubr.f32.mxu1 %v5099_v43 }
 0x10b   : > { %3208 = vmatmul.mubr.f32.vlgmr.msra.gmra.mrb[0].mxu0 %v4105_v34  ;;  %v5104_v34 = vld [vmem:[#allocation30_spill] sm:$0xff] }
 0x10c   : > { %3210 = vmatprep.mubr.f32.mxu0 %v4128_v44  ;;  %v5105_v44 = vld [vmem:[#allocation32_spill] sm:$0xff] }
 0x10d   : > { %2971 = vmatmul.mubr.f32.gmra.mrb[2].mxu1 %v5100_v47 }
 0x10e   : > { %2973 = vmatprep.mubr.f32.mxu1 %v5101_v2 }
 0x10f   : > { %3211 = vmatmul.mubr.f32.gmra.mrb[2].mxu0 %v4131_v46  ;;  %v5106_v46 = vld [vmem:[#allocation33_spill] sm:$0xff] }
 0x110   : > { %3213 = vmatprep.mubr.f32.mxu0 %v4151_v54  ;;  %v5107_v54 = vld [vmem:[#allocation35_spill] sm:$0xff] }
 0x111   : > { %2974 = vmatmul.mubr.f32.gmra.mrb[4].mxu1 %v5102_v16 }
 0x112   : > { %2976 = vmatprep.mubr.f32.mxu1 %v5103_v18 }
 0x113   : > { %3214 = vmatmul.mubr.f32.gmra.mrb[4].mxu0 %v5081_v11 }
 0x114   : > { %3216 = vmatprep.mubr.f32.mxu0 %v5082_v22 }
 0x115   : > { %2977 = vmatmul.mubr.f32.gmra.mrb[6].mxu1 %v5104_v34 }
 0x116   : > { %2979 = vmatprep.mubr.f32.mxu1 %v5105_v44 }
 0x117   : > { %3217 = vmatmul.mubr.f32.gmra.mrb[6].mxu0 %v5084_v14 }
 0x118   : > { %3219 = vmatprep.mubr.f32.mxu0 %v5085_v23 }
 0x119   : > { %2980 = vmatmul.mubr.f32.gmra.mrb[8].mxu1 %v5106_v46 }
 0x11a   : > { %2982 = vmatprep.mubr.f32.mxu1 %v5107_v54 }
 0x11b   : > { %3220 = vmatmul.mubr.f32.gmra.mrb[8].mxu0 %v5087_v19 }
 0x11c   : > { %3222 = vmatprep.mubr.f32.mxu0 %v5088_v37 }
 0x11d   : > { %2983 = vmatmul.mubr.f32.gmra.mrb[10].mxu1 %v5108_v7 }
 0x11e   : > { %2985 = vmatprep.mubr.f32.mxu1 %v5109_v5 }
 0x11f   : > { %3223 = vmatmul.mubr.f32.gmra.mrb[10].mxu0 %v4318_v28  ;;  %v5111_v28 = vld [vmem:[#allocation44_spill] sm:$0xff] }
 0x120   : > { %3225 = vmatprep.mubr.f32.mxu0 %v4320_v20  ;;  %v5113_v20 = vld [vmem:[#allocation46_spill] sm:$0xff] }
 0x121   : > { %2986 = vmatmul.mubr.f32.gmra.mrb[12].mxu1 %v5110_v3 }
 0x122   : > { %2988 = vmatprep.mubr.f32.mxu1 %v4404_v15 }
 0x123   : > { %3226 = vmatmul.mubr.f32.gmra.mrb[12].mxu0 %v5091_v41 }
 0x124   : > { %3228 = vmatprep.mubr.f32.mxu0 %v5092_v59 }
 0x125   : > { %2989 = vmatmul.mubr.f32.gmra.mrb[14].mxu1 %v4447_v9  ;;  %v5112_v9 = vld [vmem:[#allocation45_spill] sm:$0xff] }
 0x126   : > { %2991 = vmatprep.mubr.f32.mxu1 %v4459_v26 }
 0x127   : > { %3229 = vmatmul.mubr.f32.gmra.mrb[14].mxu0 %v4406_v13  ;;  %v5114_v13 = vld [vmem:[#allocation47_spill] sm:$0xff] }
 0x128   : > { %3231 = vmatprep.mubr.f32.mxu0 %v4425_v53 }
 0x129   : > { %2992 = vmatmul.mubr.f32.gmra.mrb[16].mxu1 %v4462_v63 }
 0x12a   : > { %2994 = vmatprep.mubr.f32.mxu1 %v4473_v60 }
 0x12b   : > { %3232 = vmatmul.mubr.f32.gmra.mrb[16].mxu0 %v4427_v30 }
 0x12c   : > { %3234 = vmatprep.mubr.f32.mxu0 %v4440_v51 }
 0x12d   : > { %2995 = vmatmul.mubr.f32.gmra.mrb[18].mxu1 %v4498_v31 }
 0x12e   : > { %2997 = vmatprep.mubr.f32.mxu1 %v4520_v0 }
 0x12f   : > { %3235 = vmatmul.mubr.f32.gmra.mrb[18].mxu0 %v4464_v27 }
 0x130   : > { %3237 = vmatprep.mubr.f32.mxu0 %v5094_v35 }
 0x131   : > { %2998 = vmatmul.mubr.f32.gmra.mrb[20].mxu1 %v4530_v10 }
 0x132   : > { %3000 = vmatprep.mubr.f32.mxu1 %v4544_v6 }
 0x133   : > { %3238 = vmatmul.mubr.f32.gmra.mrb[20].mxu0 %v5095_v38 }
 0x134   : > { %3240 = vmatprep.mubr.f32.mxu0 %v5096_v39 }
 0x135   : > { %3001 = vmatmul.mubr.f32.gmra.mrb[22].mxu1 %v5111_v28 }
 0x136   : > { %3003 = vmatprep.mubr.f32.mxu1 %v5112_v9 }
 0x137   : > { %3241 = vmatmul.mubr.f32.gmra.mrb[22].mxu0 %v4539_v57 }
 0x138   : > { %3243 = vmatprep.mubr.f32.mxu0 %v4549_v55 }
 0x139   : > { %3004 = vmatmul.mubr.f32.gmra.mrb[24].mxu1 %v5113_v20 }
 0x13a   : > { %3006 = vmatprep.mubr.f32.mxu1 %v5114_v13 }
 0x13b   : > { %3244 = vmatmul.mubr.f32.gmra.mrb[24].mxu0 %v4563_v25 }
 0x13c   : > { %3246 = vmatprep.mubr.f32.mxu0 %v4577_v8 }
 0x13d   : > { %3007 = vmatmul.mubr.f32.gmra.mrb[26].mxu1 %v4637_v58 }
 0x13e   : > { %3009 = vmatprep.mubr.f32.mxu1 %v4646_v56 }
 0x13f   : > { %3247 = vmatmul.mubr.f32.gmra.mrb[26].mxu0 %v4615_v4 }
 0x140   : > { %3249 = vmatprep.mubr.f32.mxu0 %v4623_v45 }
 0x141   : > { %3010 = vmatmul.mubr.f32.gmra.mrb[28].mxu1 %v4657_v40 }
 0x142   : > { %3012 = vmatprep.mubr.f32.mxu1 %v4666_v29 }
 0x143   : > { %3250 = vmatmul.mubr.f32.gmra.mrb[28].mxu0 %v4639_v36 }
 0x144   : > { %3252 = vmatprep.mubr.f32.mxu0 %v4648_v50 }
 0x145   : > { %3013 = vmatmul.mubr.f32.gmra.mrb[30].mxu1 %v4671_v42 }
 0x147   : > { %3253 = vmatmul.mubr.f32.gmra.mrb[30].mxu0 %v4659_v24 }
 0x1dc   : > { %v2969_v25 = vpop.f32.mrb[0].mxu1 }
 0x1dd   : > { %v1113_v30 = vpop.f32.mrb[1].mxu1 }
 0x1de   : > { %v3209_v15 = vpop.f32.mrb[0].mxu0 }
 0x1df   : > { %v3447_v53 = vadd.f32 %v3209_v15, %v2969_v25  ;;  %v2059_v51 = vpop.f32.mrb[1].mxu0 }
 0x1e0   : > { %v3448_v26 = vadd.f32 %v2059_v51, %v1113_v30  ;;  %v2972_v31 = vpop.f32.mrb[2].mxu1 }
 0x1e1   : > { %v2291_v63 = vmul.f32 %v3447_v53, %v3447_v53  ;;  %v1127_v57 = vpop.f32.mrb[3].mxu1 }
 0x1e2   : > { %v2250_v27 = vadd.f32 %v3448_v26, %v3447_v53  ;;  %v2290_v60 = vmul.f32 %v3448_v26, %v3448_v26  ;;  %v3212_v0 = vpop.f32.mrb[2].mxu0 }
 0x1e3   : > { %v3449_v10 = vadd.f32 %v3212_v0, %v2972_v31  ;;  %v2071_v6 = vpop.f32.mrb[3].mxu0 }
 0x1e4   : > { %v2322_v55 = vadd.f32 %v2291_v63, %v2290_v60  ;;  %v3450_v8 = vadd.f32 %v2071_v6, %v1127_v57  ;;  %v2975_v58 = vpop.f32.mrb[4].mxu1 }
 0x1e5   : > { %v1141_v56 = vpop.f32.mrb[5].mxu1  ;;  %v2293_v40 = vmul.f32 %v3449_v10, %v3449_v10 }
 0x1e6   : > { %v2251_v4 = vadd.f32 %v3450_v8, %v2250_v27  ;;  %v2292_v45 = vmul.f32 %v3450_v8, %v3450_v8  ;;  %v3215_v24 = vpop.f32.mrb[4].mxu0 }
 0x1e7   : > { %v3451_v36 = vadd.f32 %v3215_v24, %v2975_v58  ;;  %v2083_v50 = vpop.f32.mrb[5].mxu0 }
 0x1e8   : > { %v2323_v29 = vadd.f32 %v2322_v55, %v2292_v45  ;;  %v3452_v42 = vadd.f32 %v2083_v50, %v1141_v56  ;;  %v2252_v49 = vadd.f32 %v3449_v10, %v2251_v4  ;;  %v2978_v11 = vpop.f32.mrb[6].mxu1 }
 0x1e9   : > { %v1155_v14 = vpop.f32.mrb[7].mxu1  ;;  %v2295_v52 = vmul.f32 %v3451_v36, %v3451_v36 }
 0x1ea   : > { %v2253_v62 = vadd.f32 %v3452_v42, %v2252_v49  ;;  %v2294_v21 = vmul.f32 %v3452_v42, %v3452_v42  ;;  %v2324_v32 = vadd.f32 %v2323_v29, %v2293_v40  ;;  %v3218_v22 = vpop.f32.mrb[6].mxu0 }
 0x1eb   : > { %v3453_v48 = vadd.f32 %v3218_v22, %v2978_v11  ;;  %v2095_v23 = vpop.f32.mrb[7].mxu0 }
 0x1ec   : > { %v2325_v19 = vadd.f32 %v2324_v32, %v2294_v21  ;;  %v3454_v37 = vadd.f32 %v2095_v23, %v1155_v14  ;;  %v2254_v1 = vadd.f32 %v3451_v36, %v2253_v62  ;;  %v2981_v33 = vpop.f32.mrb[8].mxu1 }
 0x1ed   : > { %v1169_v39 = vpop.f32.mrb[9].mxu1  ;;  %v2297_v61 = vmul.f32 %v3453_v48, %v3453_v48 }
 0x1ee   : > { %v2255_v12 = vadd.f32 %v3454_v37, %v2254_v1  ;;  %v2296_v41 = vmul.f32 %v3454_v37, %v3454_v37  ;;  %v2326_v59 = vadd.f32 %v2325_v19, %v2295_v52  ;;  %v3221_v35 = vpop.f32.mrb[8].mxu0 }
 0x1ef   : > { %v3455_v38 = vadd.f32 %v3221_v35, %v2981_v33  ;;  %v2107_v17 = vpop.f32.mrb[9].mxu0 }
 0x1f0   : > { %v2327_v43 = vadd.f32 %v2326_v59, %v2296_v41  ;;  %v3456_v47 = vadd.f32 %v2107_v17, %v1169_v39  ;;  %v2256_v2 = vadd.f32 %v3453_v48, %v2255_v12  ;;  %v2984_v44 = vpop.f32.mrb[10].mxu1 }
 0x1f1   : > { %v1183_v7 = vpop.f32.mrb[11].mxu1  ;;  %v2299_v3 = vmul.f32 %v3455_v38, %v3455_v38 }
 0x1f2   : > { %v2257_v16 = vadd.f32 %v3456_v47, %v2256_v2  ;;  %v2298_v18 = vmul.f32 %v3456_v47, %v3456_v47  ;;  %v2328_v34 = vadd.f32 %v2327_v43, %v2297_v61  ;;  %v3224_v46 = vpop.f32.mrb[10].mxu0 }
 0x1f3   : > { %v3457_v54 = vadd.f32 %v3224_v46, %v2984_v44  ;;  %v2119_v5 = vpop.f32.mrb[11].mxu0 }
 0x1f4   : > { %v2329_v28 = vadd.f32 %v2328_v34, %v2298_v18  ;;  %v3458_v9 = vadd.f32 %v2119_v5, %v1183_v7  ;;  %v2258_v20 = vadd.f32 %v3455_v38, %v2257_v16  ;;  %v2987_v53 = vpop.f32.mrb[12].mxu1 }
 0x1f5   : > { %v1197_v26 = vpop.f32.mrb[13].mxu1  ;;  %v2301_v27 = vmul.f32 %v3457_v54, %v3457_v54 }
 0x1f6   : > { %v2259_v13 = vadd.f32 %v3458_v9, %v2258_v20  ;;  %v2300_v25 = vmul.f32 %v3458_v9, %v3458_v9  ;;  %v2330_v15 = vadd.f32 %v2329_v28, %v2299_v3  ;;  %v3227_v30 = vpop.f32.mrb[12].mxu0 }
 0x1f7   : > { %v3459_v51 = vadd.f32 %v3227_v30, %v2987_v53  ;;  %v2131_v63 = vpop.f32.mrb[13].mxu0 }
 0x1f8   : > { %v2331_v60 = vadd.f32 %v2330_v15, %v2300_v25  ;;  %v3460_v31 = vadd.f32 %v2131_v63, %v1197_v26  ;;  %v2260_v0 = vadd.f32 %v3457_v54, %v2259_v13  ;;  %v2990_v55 = vpop.f32.mrb[14].mxu1 }
 0x1f9   : > { %v1211_v45 = vpop.f32.mrb[15].mxu1  ;;  %v2303_v24 = vmul.f32 %v3459_v51, %v3459_v51 }
 0x1fa   : > { %v2261_v10 = vadd.f32 %v3460_v31, %v2260_v0  ;;  %v2302_v57 = vmul.f32 %v3460_v31, %v3460_v31  ;;  %v2332_v6 = vadd.f32 %v2331_v60, %v2301_v27  ;;  %v3230_v8 = vpop.f32.mrb[14].mxu0 }
 0x1fb   : > { %v3461_v4 = vadd.f32 %v3230_v8, %v2990_v55  ;;  %v2143_v58 = vpop.f32.mrb[15].mxu0 }
 0x1fc   : > { %v2333_v36 = vadd.f32 %v2332_v6, %v2302_v57  ;;  %v3462_v56 = vadd.f32 %v2143_v58, %v1211_v45  ;;  %v2262_v50 = vadd.f32 %v3459_v51, %v2261_v10  ;;  %v2993_v49 = vpop.f32.mrb[16].mxu1 }
 0x1fd   : > { %v1225_v32 = vpop.f32.mrb[17].mxu1  ;;  %v2305_v22 = vmul.f32 %v3461_v4, %v3461_v4 }
 0x1fe   : > { %v2263_v40 = vadd.f32 %v3462_v56, %v2262_v50  ;;  %v2304_v29 = vmul.f32 %v3462_v56, %v3462_v56  ;;  %v2334_v42 = vadd.f32 %v2333_v36, %v2303_v24  ;;  %v3233_v62 = vpop.f32.mrb[16].mxu0 }
 0x1ff   : > { %v3463_v21 = vadd.f32 %v3233_v62, %v2993_v49  ;;  %v2155_v11 = vpop.f32.mrb[17].mxu0 }
 0x200   : > { %v2335_v48 = vadd.f32 %v2334_v42, %v2304_v29  ;;  %v3464_v14 = vadd.f32 %v2155_v11, %v1225_v32  ;;  %v2264_v23 = vadd.f32 %v3461_v4, %v2263_v40  ;;  %v2996_v1 = vpop.f32.mrb[18].mxu1 }
 0x201   : > { %v1239_v59 = vpop.f32.mrb[19].mxu1  ;;  %v2307_v35 = vmul.f32 %v3463_v21, %v3463_v21 }
 0x202   : > { %v2265_v52 = vadd.f32 %v3464_v14, %v2264_v23  ;;  %v2306_v19 = vmul.f32 %v3464_v14, %v3464_v14  ;;  %v2336_v37 = vadd.f32 %v2335_v48, %v2305_v22  ;;  %v3236_v12 = vpop.f32.mrb[18].mxu0 }
 0x203   : > { %v3465_v41 = vadd.f32 %v3236_v12, %v2996_v1  ;;  %v2167_v33 = vpop.f32.mrb[19].mxu0 }
 0x204   : > { %v2337_v38 = vadd.f32 %v2336_v37, %v2306_v19  ;;  %v3466_v39 = vadd.f32 %v2167_v33, %v1239_v59  ;;  %v2266_v17 = vadd.f32 %v3463_v21, %v2265_v52  ;;  %v2999_v2 = vpop.f32.mrb[20].mxu1 }
 0x205   : > { %v1253_v34 = vpop.f32.mrb[21].mxu1  ;;  %v2309_v46 = vmul.f32 %v3465_v41, %v3465_v41 }
 0x206   : > { %v2267_v61 = vadd.f32 %v3466_v39, %v2266_v17  ;;  %v2308_v43 = vmul.f32 %v3466_v39, %v3466_v39  ;;  %v2338_v47 = vadd.f32 %v2337_v38, %v2307_v35  ;;  %v3239_v16 = vpop.f32.mrb[20].mxu0 }
 0x207   : > { %v3467_v18 = vadd.f32 %v3239_v16, %v2999_v2  ;;  %v2179_v44 = vpop.f32.mrb[21].mxu0 }
 0x208   : > { %v2339_v54 = vadd.f32 %v2338_v47, %v2308_v43  ;;  %v3468_v7 = vadd.f32 %v2179_v44, %v1253_v34  ;;  %v2268_v5 = vadd.f32 %v3465_v41, %v2267_v61  ;;  %v3002_v20 = vpop.f32.mrb[22].mxu1 }
 0x209   : > { %v1267_v15 = vpop.f32.mrb[23].mxu1  ;;  %v2311_v30 = vmul.f32 %v3467_v18, %v3467_v18 }
 0x20a   : > { %v2269_v3 = vadd.f32 %v3468_v7, %v2268_v5  ;;  %v2310_v28 = vmul.f32 %v3468_v7, %v3468_v7  ;;  %v2340_v9 = vadd.f32 %v2339_v54, %v2309_v46  ;;  %v3242_v13 = vpop.f32.mrb[22].mxu0 }
 0x20b   : > { %v3469_v25 = vadd.f32 %v3242_v13, %v3002_v20  ;;  %v2191_v53 = vpop.f32.mrb[23].mxu0 }
 0x20c   : > { %v2341_v51 = vadd.f32 %v2340_v9, %v2310_v28  ;;  %v3470_v26 = vadd.f32 %v2191_v53, %v1267_v15  ;;  %v2270_v63 = vadd.f32 %v3467_v18, %v2269_v3  ;;  %v3005_v0 = vpop.f32.mrb[24].mxu1 }
 0x20d   : > { %v1281_v6 = vpop.f32.mrb[25].mxu1  ;;  %v2313_v8 = vmul.f32 %v3469_v25, %v3469_v25 }
 0x20e   : > { %v2271_v27 = vadd.f32 %v3470_v26, %v2270_v63  ;;  %v2312_v60 = vmul.f32 %v3470_v26, %v3470_v26  ;;  %v2342_v31 = vadd.f32 %v2341_v51, %v2311_v30  ;;  %v3245_v10 = vpop.f32.mrb[24].mxu0 }
 0x20f   : > { %v3471_v57 = vadd.f32 %v3245_v10, %v3005_v0  ;;  %v2203_v55 = vpop.f32.mrb[25].mxu0  ;;  %v2289_v0 = vld [vmem:[#allocation8] sm:$0x1] }
 0x210   : > { %v2343_v4 = vadd.f32 %v2342_v31, %v2312_v60  ;;  %v3472_v45 = vadd.f32 %v2203_v55, %v1281_v6  ;;  %v2272_v58 = vadd.f32 %v3469_v25, %v2271_v27  ;;  %v3008_v50 = vpop.f32.mrb[26].mxu1  ;;  %v2249_v27 = vld [vmem:[#allocation7] sm:$0x1] }
 0x211   : > { %v1295_v42 = vpop.f32.mrb[27].mxu1  ;;  %v2315_v62 = vmul.f32 %v3471_v57, %v3471_v57 }
 0x212   : > { %v2273_v24 = vadd.f32 %v3472_v45, %v2272_v58  ;;  %v2314_v36 = vmul.f32 %v3472_v45, %v3472_v45  ;;  %v2344_v56 = vadd.f32 %v2343_v4, %v2313_v8  ;;  %v3248_v40 = vpop.f32.mrb[26].mxu0 }
 0x213   : > { %v3473_v29 = vadd.f32 %v3248_v40, %v3008_v50  ;;  %v2215_v49 = vpop.f32.mrb[27].mxu0 }
 0x214   : > { %v2345_v21 = vadd.f32 %v2344_v56, %v2314_v36  ;;  %v3474_v32 = vadd.f32 %v2215_v49, %v1295_v42  ;;  %v2274_v11 = vadd.f32 %v3471_v57, %v2273_v24  ;;  %v3011_v23 = vpop.f32.mrb[28].mxu1 }
 0x215   : > { %v1309_v37 = vpop.f32.mrb[29].mxu1  ;;  %v2317_v12 = vmul.f32 %v3473_v29, %v3473_v29 }
 0x216   : > { %v2275_v22 = vadd.f32 %v3474_v32, %v2274_v11  ;;  %v2316_v48 = vmul.f32 %v3474_v32, %v3474_v32  ;;  %v2346_v14 = vadd.f32 %v2345_v21, %v2315_v62  ;;  %v3251_v52 = vpop.f32.mrb[28].mxu0 }
 0x217   : > { %v3475_v19 = vadd.f32 %v3251_v52, %v3011_v23  ;;  %v2227_v1 = vpop.f32.mrb[29].mxu0 }
 0x218   : > { %v2347_v41 = vadd.f32 %v2346_v14, %v2316_v48  ;;  %v3476_v59 = vadd.f32 %v2227_v1, %v1309_v37  ;;  %v2276_v33 = vadd.f32 %v3473_v29, %v2275_v22  ;;  %v3014_v17 = vpop.f32.mrb[30].mxu1 }
 0x219   : > { %v1323_v47 = vpop.f32.mrb[31].mxu1  ;;  %v2319_v16 = vmul.f32 %v3475_v19, %v3475_v19 }
 0x21a   : > { %v2277_v35 = vadd.f32 %v3476_v59, %v2276_v33  ;;  %v2318_v38 = vmul.f32 %v3476_v59, %v3476_v59  ;;  %v2348_v39 = vadd.f32 %v2347_v41, %v2317_v12  ;;  %v3254_v61 = vpop.f32.mrb[30].mxu0 }
 0x21b   : > { %v3477_v43 = vadd.f32 %v3254_v61, %v3014_v17  ;;  %v2239_v2 = vpop.f32.mrb[31].mxu0 }
 0x21c   : > { %v2349_v18 = vadd.f32 %v2348_v39, %v2318_v38  ;;  %v3478_v34 = vadd.f32 %v2239_v2, %v1323_v47  ;;  %v2278_v44 = vadd.f32 %v3475_v19, %v2277_v35 }
 0x21d   : > { %v2321_v5 = vmul.f32 %v3477_v43, %v3477_v43 }
 0x21e   : > { %v2279_v46 = vadd.f32 %v3478_v34, %v2278_v44  ;;  %v2320_v54 = vmul.f32 %v3478_v34, %v3478_v34  ;;  %v2350_v7 = vadd.f32 %v2349_v18, %v2319_v16 }
 0x220   : > { %v2280_v3 = vadd.f32 %v3477_v43, %v2279_v46  ;;  %v2351_v28 = vadd.f32 %v2350_v7, %v2320_v54 }
 0x222   : > { %v2281_v9 = vrot.slane %v2280_v3, 4  ;;  %v2352_v20 = vadd.f32 %v2351_v28, %v2321_v5 }
 0x224   : > { %v2282_v13 = vadd.f32 %v2281_v9, %v2280_v3  ;;  %v2353_v25 = vrot.slane %v2352_v20, 4 }
 0x226   : > { %v2283_v15 = vrot.slane %v2282_v13, 2  ;;  %v2354_v53 = vadd.f32 %v2353_v25, %v2352_v20 }
 0x228   : > { %v2284_v30 = vadd.f32 %v2283_v15, %v2282_v13  ;;  %v2355_v51 = vrot.slane %v2354_v53, 2 }
 0x22a   : > { %v2285_v26 = vrot.slane %v2284_v30, 1  ;;  %v2356_v63 = vadd.f32 %v2355_v51, %v2354_v53 }
 0x22c   : > { %v2286_v60 = vadd.f32 %v2285_v26, %v2284_v30  ;;  %v2357_v31 = vrot.slane %v2356_v63, 1 }
 0x22e   : > { %v2287_v10 = vadd.f32 %v2286_v60, %v2249_v27  ;;  %v2358_v57 = vadd.f32 %v2357_v31, %v2356_v63 }
 0x230   : > { %2288 = vst [vmem:[#allocation7] sm:$0x1] %v2287_v10  ;;  %v2359_v6 = vadd.f32 %v2358_v57, %v2289_v0 }
 0x231   : > { %3761 = shalt.err (!%p3758_p13)
}
 0x232   : > { %s3762_s5 = scalar_lea.hbm %s4915_s2, 16 }
 0x233   : > { %p3763_p2 = scmp.ne.s32.totalorder %s4915_s2, %s3762_s5  ;;  %p3768_p0 = scmp.lt.u32.totalorder %s3762_s5, %s4915_s2 }
 0x235   : > { %p3764_p3 = pnand %p3763_p2, %p4839_p1 }
 0x237   : > { %p3765_p12 = pneg %p3764_p3 }
 0x239   : > { %p3770_p6 = pnand %p3768_p0, %p3765_p12 }
 0x23b   : > { %3773 = shalt.err (!%p3770_p6)
}
 0x23c   : > { %3614 = dma.vmem_to_hbm [thread:$0]  (%p4839_p1), %s2371_s19, 16, %s4915_s2, [#allocation4]   ;;  %2360 = vst [vmem:[#allocation8] sm:$0x1] %v2359_v6 }
 0x23d   : > { %s3774_s30 = scalar_lea.vmem %s4843_s7, 16  ;;  %s3780_s9 = scalar_lea.vmem %s4843_s7, 32 }
 0x23e   : > { %p3775_p7 = scmp.ne.s32.totalorder %s4843_s7, %s3774_s30  ;;  %p3781_p8 = scmp.lt.s32.totalorder %s4843_s7, %s4843_s7 }
 0x23f   : > { %p3782_p9 = scmp.lt.s32.totalorder %s3780_s9, %s3774_s30 }
 0x240   : > { %p3776_p4 = pnand %p3775_p7, %p4839_p1 }
 0x241   : > { %p3783_p10 = por %p3782_p9, %p3781_p8 }
 0x242   : > { %p3777_p5 = pneg %p3776_p4 }
 0x244   : > { %p3784_p11 = pnand %p3783_p10, %p3777_p5 }
 0x246   : > { %3787 = shalt.err (!%p3784_p11)
}
 0x247   : > { %s3788_s12 = scalar_lea.hbm %s4916_s3, 16 }
 0x248   : > { %p3789_p13 = scmp.ne.s32.totalorder %s4916_s3, %s3788_s12  ;;  %p3794_p12 = scmp.lt.u32.totalorder %s3788_s12, %s4916_s3 }
 0x24a   : > { %p3790_p2 = pnand %p3789_p13, %p4839_p1 }
 0x24c   : > { %p3791_p3 = pneg %p3790_p2 }
 0x24e   : > { %p3796_p0 = pnand %p3794_p12, %p3791_p3 }
 0x250   : > { %3799 = shalt.err (!%p3796_p0)
}
 0x251   : > { %3616 = dma.vmem_to_hbm [thread:$0]  (%p4839_p1), %s4843_s7, 16, %s4916_s3, [#allocation9]  }
 0x252   : > { %3833 = dma.done.wait (%p4839_p1), [#allocation4], 16  }
 0x253   : > { %3835 = vsyncadd (%p4839_p1), [#allocation4], 4294967280 }
 0x254   : > { %3837 = dma.done.wait (%p4839_p1), [#allocation9], 16  }
 0x255   : > { %3839 = vsyncadd (%p4839_p1), [#allocation9], 4294967280 }
 0x256 PF: > { %s20_s17 = sadd.s32 1, %s3862_s17   ;;  %s5116_s12 = smov %s3846_s13 }
 0x257   : > { %p17_p6 = scmp.ge.s32.totalorder %s20_s17, 4   ;;  %s5117_s13 = smov %s3850_s14 }
 0x258   : > { %s5118_s14 = smov %s3979_s27  ;;  %s5119_s15 = smov %s3858_s16 }
 0x259   : > { %s5120_s16 = smov %s5122_s25  ;;  %19 = sbr.rel (!%p17_p6) target bundleno = 7 (0x7), region = 84 }
 0x260   :  { %2400 = vsyncpa [#allocation3], 1 }
 0x261   :  { %2402 = vsyncpa [#allocation3 + $0x1], 1 }
 0x262   :  { %2403 = vsyncpa [#allocation6], 1 }
 0x263   :  { %2404 = vsyncpa [#allocation4], 1 }
 0x264   :  { %2406 = vsyncpa [#allocation4 + $0x1], 1 }
 0x265   :  { %2407 = vsyncpa [#allocation9], 1 }

</bundles_post_ra>
